<compile_context>
chip_gen: v7x
topology: tpu7x:2x2x1
jax: 0.10.0
libtpu: 0.0.40
codegen_flags: <defaults>
</compile_context>

<pallas_src>
import numpy as np
import jax
import jax.numpy as jnp
from jax.experimental import pallas as pl
from jax.experimental.pallas import tpu as pltpu


# ----------------------------------------------------------------------------
# Glue: xy2uv (tiny elementwise coordinate transform on (B, N, 3) points).
# TODO(synk): atan/atan2 lowering in Mosaic is not guaranteed, so this tiny
#             prologue stays in plain JAX; the grid_sample hot path is Pallas.
# ----------------------------------------------------------------------------
def xy2uv(xyz, eps=0.001):
    x = xyz[..., 0] + eps
    y = xyz[..., 1] + eps
    z = xyz[..., 2] + eps
    u = jnp.arctan2(x, -y)
    v = -jnp.arctan(z / jnp.sqrt(x ** 2 + y ** 2))
    pi = float(np.pi)
    u = u / pi
    v = 2.0 * v / pi
    u = jnp.clip(u, -1.0, 1.0)
    v = jnp.clip(v, -1.0, 1.0)
    return jnp.stack([u, v], axis=-1)  # (B, N, 2)


# ----------------------------------------------------------------------------
# Chip-dependent knobs.
# ----------------------------------------------------------------------------
def _tpu_kind():
    try:
        return jax.devices()[0].device_kind.lower()
    except Exception:
        return ""


def _preferred_n_tile():
    kind = _tpu_kind()
    # v5e MXU output is 128 wide; v6e/v7x are 256 wide.
    return 128 if "v5" in kind else 256


def _vmem_cap_bytes():
    kind = _tpu_kind()
    return (64 << 20) if ("v7" in kind or "7x" in kind) else (128 << 20)


# Levels with H*W at or below this use the dense flattened-H*W MXU contraction.
_DENSE_HW_MAX = 2048


def _plan_levels(level_shapes):
    """Static per-level plan: ('dense', C, H, W, H*W) or ('sep', C, H, W, H_pad)."""
    plan = []
    for (c, h, w) in level_shapes:
        if h * w <= _DENSE_HW_MAX and w % 8 == 0:
            plan.append(("dense", c, h, w, h * w))
        else:
            plan.append(("sep", c, h, w, ((h + 7) // 8) * 8))
    return tuple(plan)


# ----------------------------------------------------------------------------
# Fused multi-level bilinear grid_sample (align_corners=True).
# ----------------------------------------------------------------------------
def _make_fused_grid_sample_kernel(plan, n_tile):
    n_levels = len(plan)

    def kernel(uv_ref, *refs):
        feat_refs = refs[:n_levels]
        out_refs = refs[n_levels:]

        uv = uv_ref[0]            # (2, n_tile): point index lives on the lane axis
        u = uv[0:1, :]            # (1, n_tile)  x -> width
        v = uv[1:2, :]            # (1, n_tile)  y -> height

        def taps(size, coord):
            # align_corners=True pixel coordinate + bilinear taps along one axis.
            p = (coord + 1.0) * (0.5 * (size - 1))
            p0f = jnp.floor(p)
            w1 = p - p0f
            w0 = 1.0 - w1
            i0 = jnp.clip(p0f.astype(jnp.int32), 0, size - 1)
            # Border clamp: the clamped tap carries weight exactly 0 (uv is
            # clipped to [-1, 1]), so this matches grid_sample exactly.
            i1 = jnp.minimum(i0 + 1, size - 1)
            return i0, i1, w0, w1

        for feat_ref, out_ref, (kind, C, H, W, extra) in zip(
                feat_refs, out_refs, plan):
            x0, x1, wx0, wx1 = taps(W, u)
            y0, y1, wy0, wy1 = taps(H, v)

            col = jax.lax.broadcasted_iota(jnp.int32, (W, n_tile), 0)
            wx = (jnp.where(col == x0, wx0, 0.0)
                  + jnp.where(col == x1, wx1, 0.0))               # (W, n_tile) f32

            if kind == "dense":
                # Coarse level: one MXU contraction over the flattened H*W axis.
                row = jax.lax.broadcasted_iota(jnp.int32, (H, n_tile), 0)
                wy = (jnp.where(row == y0, wy0, 0.0)
                      + jnp.where(row == y1, wy1, 0.0))           # (H, n_tile)
                # Separable outer product -> dense (H*W, n_tile) bilinear weight.
                # W % 8 == 0 (guaranteed by the plan) keeps the reshape layout-free.
                whw = (wy[:, None, :] * wx[None, :, :]).reshape(H * W, n_tile)
                feat = feat_ref[0]                                # (C, H*W) native dtype
                acc = jnp.dot(feat, whw.astype(feat.dtype),
                              preferred_element_type=jnp.float32)  # (C, n_tile) f32
            else:
                # Large level: separable form — W contracted on the MXU,
                # H reduced on the VPU/XLU.
                Hp = extra                                        # H padded to mult of 8
                row = jax.lax.broadcasted_iota(jnp.int32, (Hp, n_tile), 0)
                wy = (jnp.where(row == y0, wy0, 0.0)
                      + jnp.where(row == y1, wy1, 0.0))           # (Hp, n_tile)
                feat2d = feat_ref[0]                              # (C*Hp, W) native dtype
                p = jnp.dot(feat2d, wx.astype(feat2d.dtype),
                            preferred_element_type=jnp.float32)   # (C*Hp, n_tile) f32
                p = p.reshape(C, Hp, n_tile)                      # layout-free (Hp % 8 == 0)
                acc = jnp.sum(p * wy[None, :, :], axis=1)         # (C, n_tile)

            out_ref[0] = acc.astype(out_ref.dtype)

    return kernel


def fused_grid_sample(uv, img_features, n_tile=None):
    """Bilinear grid_sample (align_corners=True) of all pyramid levels, fused.

    uv: (B, N, 2) normalized coords; img_features: list of (B, C_l, H_l, W_l).
    Returns (B, N, sum_l C_l).
    """
    B, N, _ = uv.shape
    level_shapes = tuple((int(f.shape[1]), int(f.shape[2]), int(f.shape[3]))
                         for f in img_features)
    plan = _plan_levels(level_shapes)
    out_dtype = jnp.result_type(*[f.dtype for f in img_features])

    if n_tile is None:
        n_tile = _preferred_n_tile()
    # Never use a tile wider than the (128-rounded) problem actually needs.
    n_tile = min(n_tile, pl.cdiv(N, 128) * 128)
    n_pad = pl.cdiv(N, n_tile) * n_tile

    # Lane-friendly coordinate layout: point index on lanes, padded to n_tile.
    uv_t = jnp.transpose(uv.astype(jnp.float32), (0, 2, 1))      # (B, 2, N) - tiny
    if n_pad != N:
        uv_t = jnp.pad(uv_t, ((0, 0), (0, 0), (0, n_pad - N)))

    # Native NCHW kept: all per-level reshapes below are free/contiguous; no HBM
    # transpose of the feature maps and no in-kernel dtype copy of them either.
    in_specs = [pl.BlockSpec((1, 2, n_tile), lambda b, j: (b, 0, j))]
    feats2d = []
    for f, (kind, c, h, w, extra) in zip(img_features, plan):
        if kind == "dense":
            f2 = f.reshape(B, c, h * w)
            in_specs.append(pl.BlockSpec((1, c, h * w), lambda b, j: (b, 0, 0)))
        else:
            hp = extra
            if hp != h:  # pad H to a multiple of 8 so the in-kernel reshape is free
                f = jnp.pad(f, ((0, 0), (0, 0), (0, hp - h), (0, 0)))
            f2 = f.reshape(B, c * hp, w)
            in_specs.append(pl.BlockSpec((1, c * hp, w), lambda b, j: (b, 0, 0)))
        feats2d.append(f2)
    # TODO(synk): if a pyramid's double-buffered level blocks ever exceed v7x's
    #             64 MiB VMEM, switch the feature in_specs to
    #             pipeline_mode=pl.Buffered(1) (their block index is j-invariant,
    #             so double-buffering buys nothing within a batch) and/or add a
    #             W-tiled "arbitrary" reduction axis with a VMEM accumulator.

    # One output per level: sublane-aligned, lane-dense stores, no in-kernel
    # concatenate along the sublane axis.
    out_shapes = tuple(jax.ShapeDtypeStruct((B, c, n_pad), out_dtype)
                       for (_, c, _, _, _) in plan)
    out_specs = [pl.BlockSpec((1, c, n_tile), lambda b, j: (b, 0, j))
                 for (_, c, _, _, _) in plan]

    # VMEM budget: double-buffered feature/coord/output blocks plus headroom for
    # the (H*W, n_tile)/(C*Hp, n_tile) f32 intermediates, capped at physical VMEM.
    feat_blk = sum(int(np.prod(f2.shape[1:])) * f2.dtype.itemsize for f2 in feats2d)
    out_blk = sum(c * n_tile * jnp.dtype(out_dtype).itemsize
                  for (_, c, _, _, _) in plan)
    uv_blk = 2 * n_tile * 4
    needed = 2 * (feat_blk + out_blk + uv_blk) + (8 << 20)
    vmem_limit = int(min(_vmem_cap_bytes(), max(needed, 32 << 20)))

    # B stays the OUTER grid axis and the feature index_map is j-invariant so
    # every level's full map is DMA'd once per batch.  With B >= 2 the inner
    # N-tile axis is "arbitrary" so megacore (v7x) shards on B only and the two
    # cores never duplicate feature HBM traffic.
    dim_sem = ("parallel", "arbitrary") if B >= 2 else ("parallel", "parallel")

    sampled = pl.pallas_call(
        _make_fused_grid_sample_kernel(plan, n_tile),
        out_shape=out_shapes,
        grid=(B, n_pad // n_tile),
        in_specs=in_specs,
        out_specs=out_specs,
        compiler_params=pltpu.CompilerParams(
            dimension_semantics=dim_sem,
            vmem_limit_bytes=vmem_limit),
    )(uv_t, *feats2d)

    # Small per-level (B, C_l, N_pad) -> (B, N, C_l) fixup in XLA; negligible
    # next to the feature-map HBM traffic for the small per-level C_l here.
    parts = [jnp.transpose(s, (0, 2, 1))[:, :N, :] for s in sampled]
    return jnp.concatenate(parts, axis=2)


# ----------------------------------------------------------------------------
# Full forward (use_mhsa=False, use_rnn=False -> no parameters on this path).
# ----------------------------------------------------------------------------
def gravity_projection_forward(img_features, inputs, get_vertices=True,
                               return_packed=False):
    uv = xy2uv(inputs)                                      # (B, N, 2)
    output = fused_grid_sample(uv, img_features)            # (B, N, sum C_l)
    if get_vertices:
        output = jnp.concatenate((inputs, output), axis=2)  # (B, N, 3 + sum C_l)
    if return_packed:
        output = output.reshape(-1, output.shape[-1])
    return output


# ----------------------------------------------------------------------------
# Pure-JAX reference for the grid_sample step (correctness check only).
# ----------------------------------------------------------------------------
def _ref_slice_projection(uv, feat_nchw):
    B, C, H, W = feat_nchw.shape
    u = uv[..., 0]
    v = uv[..., 1]
    x = (u + 1.0) * 0.5 * (W - 1)
    y = (v + 1.0) * 0.5 * (H - 1)
    x0 = jnp.floor(x).astype(jnp.int32)
    y0 = jnp.floor(y).astype(jnp.int32)
    x1 = x0 + 1
    y1 = y0 + 1
    wx1 = x - x0
    wx0 = 1.0 - wx1
    wy1 = y - y0
    wy0 = 1.0 - wy1

    def gather(yi, xi):
        yi = jnp.clip(yi, 0, H - 1)
        xi = jnp.clip(xi, 0, W - 1)
        return jax.vmap(lambda f, yy, xx: f[:, yy, xx].T)(feat_nchw, yi, xi)

    return (gather(y0, x0) * (wy0 * wx0)[..., None]
            + gather(y0, x1) * (wy0 * wx1)[..., None]
            + gather(y1, x0) * (wy1 * wx0)[..., None]
            + gather(y1, x1) * (wy1 * wx1)[..., None])


if __name__ == "__main__":
    key = jax.random.PRNGKey(0)
    k1, k2, k3, k4 = jax.random.split(key, 4)

    B, N = 2, 8  # batch, number of 3D vertices
    inputs = jax.random.normal(k1, (B, N, 3), dtype=jnp.float32)
    # Three pyramid levels (NCHW), as `img_features` is a list in torch.
    # The first two exercise the dense flattened-H*W MXU path, the third the
    # separable W-then-H path (H*W > 2048).
    img_features = [
        jax.random.normal(k2, (B, 4, 16, 16), dtype=jnp.float32),
        jax.random.normal(k3, (B, 8, 8, 8), dtype=jnp.float32),
        jax.random.normal(k4, (B, 2, 32, 80), dtype=jnp.float32),
    ]

    out = gravity_projection_forward(img_features, inputs)
    out = jax.block_until_ready(out)
    assert out.shape == (B, N, 3 + 4 + 8 + 2), out.shape

    # Silent correctness check against a pure-JAX reference.
    uv = xy2uv(inputs)
    ref = jnp.concatenate(
        [inputs] + [_ref_slice_projection(uv, f) for f in img_features], axis=2)
    np.testing.assert_allclose(np.asarray(out), np.asarray(ref),
                               rtol=1e-5, atol=1e-5)

    print("KERNEL_OK")
</pallas_src>

<mosaic_0001>
module attributes {stable_mosaic.version = 11 : i64} {
  func.func @kernel(%arg0: i32, %arg1: i32, %arg2: memref<1x2x128xf32, #tpu.memory_space<vmem>>, %arg3: memref<1x4x256xf32, #tpu.memory_space<vmem>>, %arg4: memref<1x8x64xf32, #tpu.memory_space<vmem>>, %arg5: memref<1x64x80xf32, #tpu.memory_space<vmem>>, %arg6: memref<1x4x128xf32, #tpu.memory_space<vmem>>, %arg7: memref<1x8x128xf32, #tpu.memory_space<vmem>>, %arg8: memref<1x2x128xf32, #tpu.memory_space<vmem>>) attributes {dimension_semantics = [#tpu.dimension_semantics<parallel>, #tpu.dimension_semantics<arbitrary>], iteration_bounds = array<i64: 2, 1>, scalar_prefetch = 0 : i64, scratch_operands = 0 : i64, tpu.core_type = #tpu.core_type<tc>, window_params = [{transform_indices = @transform_0, window_bounds = array<i64: 1, 2, 128>}, {transform_indices = @transform_1, window_bounds = array<i64: 1, 4, 256>}, {transform_indices = @transform_2, window_bounds = array<i64: 1, 8, 64>}, {transform_indices = @transform_3, window_bounds = array<i64: 1, 64, 80>}, {transform_indices = @transform_4, window_bounds = array<i64: 1, 4, 128>}, {transform_indices = @transform_5, window_bounds = array<i64: 1, 8, 128>}, {transform_indices = @transform_6, window_bounds = array<i64: 1, 2, 128>}]} {
    %c0 = arith.constant 0 : index
    %c0_0 = arith.constant 0 : index
    %c0_1 = arith.constant 0 : index
    %0 = vector.load %arg2[%c0, %c0_0, %c0_1] : memref<1x2x128xf32, #tpu.memory_space<vmem>>, vector<1x2x128xf32>
    %1 = vector.shape_cast %0 : vector<1x2x128xf32> to vector<2x128xf32>
    %2 = vector.extract_strided_slice %1 {offsets = [0, 0], sizes = [1, 128], strides = [1, 1]} : vector<2x128xf32> to vector<1x128xf32>
    %3 = vector.extract_strided_slice %1 {offsets = [1, 0], sizes = [1, 128], strides = [1, 1]} : vector<2x128xf32> to vector<1x128xf32>
    %cst = arith.constant 1.000000e+00 : f32
    %4 = vector.broadcast %cst : f32 to vector<1x128xf32>
    %5 = arith.addf %2, %4 : vector<1x128xf32>
    %cst_2 = arith.constant 7.500000e+00 : f32
    %6 = vector.broadcast %cst_2 : f32 to vector<1x128xf32>
    %7 = arith.mulf %5, %6 : vector<1x128xf32>
    %8 = math.floor %7 : vector<1x128xf32>
    %9 = arith.subf %7, %8 : vector<1x128xf32>
    %cst_3 = arith.constant 1.000000e+00 : f32
    %10 = vector.broadcast %cst_3 : f32 to vector<1x128xf32>
    %11 = arith.subf %10, %9 : vector<1x128xf32>
    %12 = arith.fptosi %8 : vector<1x128xf32> to vector<1x128xi32>
    %c0_i32 = arith.constant 0 : i32
    %c15_i32 = arith.constant 15 : i32
    %13 = vector.broadcast %c0_i32 : i32 to vector<1x128xi32>
    %14 = arith.maxsi %13, %12 : vector<1x128xi32>
    %15 = vector.broadcast %c15_i32 : i32 to vector<1x128xi32>
    %16 = arith.minsi %15, %14 : vector<1x128xi32>
    %c1_i32 = arith.constant 1 : i32
    %17 = vector.broadcast %c1_i32 : i32 to vector<1x128xi32>
    %18 = arith.addi %16, %17 : vector<1x128xi32>
    %c15_i32_4 = arith.constant 15 : i32
    %19 = vector.broadcast %c15_i32_4 : i32 to vector<1x128xi32>
    %20 = arith.minsi %18, %19 : vector<1x128xi32>
    %cst_5 = arith.constant 1.000000e+00 : f32
    %21 = vector.broadcast %cst_5 : f32 to vector<1x128xf32>
    %22 = arith.addf %3, %21 : vector<1x128xf32>
    %cst_6 = arith.constant 7.500000e+00 : f32
    %23 = vector.broadcast %cst_6 : f32 to vector<1x128xf32>
    %24 = arith.mulf %22, %23 : vector<1x128xf32>
    %25 = math.floor %24 : vector<1x128xf32>
    %26 = arith.subf %24, %25 : vector<1x128xf32>
    %cst_7 = arith.constant 1.000000e+00 : f32
    %27 = vector.broadcast %cst_7 : f32 to vector<1x128xf32>
    %28 = arith.subf %27, %26 : vector<1x128xf32>
    %29 = arith.fptosi %25 : vector<1x128xf32> to vector<1x128xi32>
    %c0_i32_8 = arith.constant 0 : i32
    %c15_i32_9 = arith.constant 15 : i32
    %30 = vector.broadcast %c0_i32_8 : i32 to vector<1x128xi32>
    %31 = arith.maxsi %30, %29 : vector<1x128xi32>
    %32 = vector.broadcast %c15_i32_9 : i32 to vector<1x128xi32>
    %33 = arith.minsi %32, %31 : vector<1x128xi32>
    %c1_i32_10 = arith.constant 1 : i32
    %34 = vector.broadcast %c1_i32_10 : i32 to vector<1x128xi32>
    %35 = arith.addi %33, %34 : vector<1x128xi32>
    %c15_i32_11 = arith.constant 15 : i32
    %36 = vector.broadcast %c15_i32_11 : i32 to vector<1x128xi32>
    %37 = arith.minsi %35, %36 : vector<1x128xi32>
    %38 = tpu.iota {dimensions = array<i32: 0>} : vector<16x128xi32>
    %39 = vector.broadcast %16 : vector<1x128xi32> to vector<16x128xi32>
    %40 = arith.cmpi eq, %38, %39 : vector<16x128xi32>
    %cst_12 = arith.constant 0.000000e+00 : f32
    %41 = vector.shape_cast %11 : vector<1x128xf32> to vector<1x128xf32>
    %42 = vector.broadcast %41 : vector<1x128xf32> to vector<16x128xf32>
    %43 = vector.broadcast %cst_12 : f32 to vector<16x128xf32>
    %44 = arith.select %40, %42, %43 : vector<16x128xi1>, vector<16x128xf32>
    %45 = vector.broadcast %20 : vector<1x128xi32> to vector<16x128xi32>
    %46 = arith.cmpi eq, %38, %45 : vector<16x128xi32>
    %cst_13 = arith.constant 0.000000e+00 : f32
    %47 = vector.shape_cast %9 : vector<1x128xf32> to vector<1x128xf32>
    %48 = vector.broadcast %47 : vector<1x128xf32> to vector<16x128xf32>
    %49 = vector.broadcast %cst_13 : f32 to vector<16x128xf32>
    %50 = arith.select %46, %48, %49 : vector<16x128xi1>, vector<16x128xf32>
    %51 = arith.addf %44, %50 : vector<16x128xf32>
    %52 = tpu.iota {dimensions = array<i32: 0>} : vector<16x128xi32>
    %53 = vector.broadcast %33 : vector<1x128xi32> to vector<16x128xi32>
    %54 = arith.cmpi eq, %52, %53 : vector<16x128xi32>
    %cst_14 = arith.constant 0.000000e+00 : f32
    %55 = vector.shape_cast %28 : vector<1x128xf32> to vector<1x128xf32>
    %56 = vector.broadcast %55 : vector<1x128xf32> to vector<16x128xf32>
    %57 = vector.broadcast %cst_14 : f32 to vector<16x128xf32>
    %58 = arith.select %54, %56, %57 : vector<16x128xi1>, vector<16x128xf32>
    %59 = vector.broadcast %37 : vector<1x128xi32> to vector<16x128xi32>
    %60 = arith.cmpi eq, %52, %59 : vector<16x128xi32>
    %cst_15 = arith.constant 0.000000e+00 : f32
    %61 = vector.shape_cast %26 : vector<1x128xf32> to vector<1x128xf32>
    %62 = vector.broadcast %61 : vector<1x128xf32> to vector<16x128xf32>
    %63 = vector.broadcast %cst_15 : f32 to vector<16x128xf32>
    %64 = arith.select %60, %62, %63 : vector<16x128xi1>, vector<16x128xf32>
    %65 = arith.addf %58, %64 : vector<16x128xf32>
    %66 = vector.shape_cast %65 : vector<16x128xf32> to vector<16x1x128xf32>
    %67 = vector.shape_cast %51 : vector<16x128xf32> to vector<1x16x128xf32>
    %68 = vector.broadcast %66 : vector<16x1x128xf32> to vector<16x16x128xf32>
    %69 = vector.broadcast %67 : vector<1x16x128xf32> to vector<16x16x128xf32>
    %70 = arith.mulf %68, %69 : vector<16x16x128xf32>
    %71 = vector.shape_cast %70 : vector<16x16x128xf32> to vector<256x128xf32>
    %c0_16 = arith.constant 0 : index
    %c0_17 = arith.constant 0 : index
    %c0_18 = arith.constant 0 : index
    %72 = vector.load %arg3[%c0_16, %c0_17, %c0_18] : memref<1x4x256xf32, #tpu.memory_space<vmem>>, vector<1x4x256xf32>
    %73 = vector.shape_cast %72 : vector<1x4x256xf32> to vector<4x256xf32>
    %cst_19 = arith.constant dense<0.000000e+00> : vector<4x128xf32>
    %74 = tpu.matmul %73, %71, %cst_19 {dimension_numbers = #tpu.dot_dimension_numbers<[1], [0], [0], [1], [0, 0, 1, 1], [], []>} : vector<4x256xf32>, vector<256x128xf32>, vector<4x128xf32> -> vector<4x128xf32>
    %c0_20 = arith.constant 0 : index
    %c0_21 = arith.constant 0 : index
    %c0_22 = arith.constant 0 : index
    %75 = vector.load %arg6[%c0_20, %c0_21, %c0_22] : memref<1x4x128xf32, #tpu.memory_space<vmem>>, vector<1x4x128xf32>
    %76 = vector.shape_cast %75 : vector<1x4x128xf32> to vector<4x128xf32>
    %77 = vector.shape_cast %74 : vector<4x128xf32> to vector<1x4x128xf32>
    tpu.vector_store %arg6[%c0_20, %c0_21, %c0_22], %77 {strides = array<i32>} : memref<1x4x128xf32, #tpu.memory_space<vmem>>, vector<1x4x128xf32>,
    %cst_23 = arith.constant 1.000000e+00 : f32
    %78 = vector.broadcast %cst_23 : f32 to vector<1x128xf32>
    %79 = arith.addf %2, %78 : vector<1x128xf32>
    %cst_24 = arith.constant 3.500000e+00 : f32
    %80 = vector.broadcast %cst_24 : f32 to vector<1x128xf32>
    %81 = arith.mulf %79, %80 : vector<1x128xf32>
    %82 = math.floor %81 : vector<1x128xf32>
    %83 = arith.subf %81, %82 : vector<1x128xf32>
    %cst_25 = arith.constant 1.000000e+00 : f32
    %84 = vector.broadcast %cst_25 : f32 to vector<1x128xf32>
    %85 = arith.subf %84, %83 : vector<1x128xf32>
    %86 = arith.fptosi %82 : vector<1x128xf32> to vector<1x128xi32>
    %c0_i32_26 = arith.constant 0 : i32
    %c7_i32 = arith.constant 7 : i32
    %87 = vector.broadcast %c0_i32_26 : i32 to vector<1x128xi32>
    %88 = arith.maxsi %87, %86 : vector<1x128xi32>
    %89 = vector.broadcast %c7_i32 : i32 to vector<1x128xi32>
    %90 = arith.minsi %89, %88 : vector<1x128xi32>
    %c1_i32_27 = arith.constant 1 : i32
    %91 = vector.broadcast %c1_i32_27 : i32 to vector<1x128xi32>
    %92 = arith.addi %90, %91 : vector<1x128xi32>
    %c7_i32_28 = arith.constant 7 : i32
    %93 = vector.broadcast %c7_i32_28 : i32 to vector<1x128xi32>
    %94 = arith.minsi %92, %93 : vector<1x128xi32>
    %cst_29 = arith.constant 1.000000e+00 : f32
    %95 = vector.broadcast %cst_29 : f32 to vector<1x128xf32>
    %96 = arith.addf %3, %95 : vector<1x128xf32>
    %cst_30 = arith.constant 3.500000e+00 : f32
    %97 = vector.broadcast %cst_30 : f32 to vector<1x128xf32>
    %98 = arith.mulf %96, %97 : vector<1x128xf32>
    %99 = math.floor %98 : vector<1x128xf32>
    %100 = arith.subf %98, %99 : vector<1x128xf32>
    %cst_31 = arith.constant 1.000000e+00 : f32
    %101 = vector.broadcast %cst_31 : f32 to vector<1x128xf32>
    %102 = arith.subf %101, %100 : vector<1x128xf32>
    %103 = arith.fptosi %99 : vector<1x128xf32> to vector<1x128xi32>
    %c0_i32_32 = arith.constant 0 : i32
    %c7_i32_33 = arith.constant 7 : i32
    %104 = vector.broadcast %c0_i32_32 : i32 to vector<1x128xi32>
    %105 = arith.maxsi %104, %103 : vector<1x128xi32>
    %106 = vector.broadcast %c7_i32_33 : i32 to vector<1x128xi32>
    %107 = arith.minsi %106, %105 : vector<1x128xi32>
    %c1_i32_34 = arith.constant 1 : i32
    %108 = vector.broadcast %c1_i32_34 : i32 to vector<1x128xi32>
    %109 = arith.addi %107, %108 : vector<1x128xi32>
    %c7_i32_35 = arith.constant 7 : i32
    %110 = vector.broadcast %c7_i32_35 : i32 to vector<1x128xi32>
    %111 = arith.minsi %109, %110 : vector<1x128xi32>
    %112 = tpu.iota {dimensions = array<i32: 0>} : vector<8x128xi32>
    %113 = vector.broadcast %90 : vector<1x128xi32> to vector<8x128xi32>
    %114 = arith.cmpi eq, %112, %113 : vector<8x128xi32>
    %cst_36 = arith.constant 0.000000e+00 : f32
    %115 = vector.shape_cast %85 : vector<1x128xf32> to vector<1x128xf32>
    %116 = vector.broadcast %115 : vector<1x128xf32> to vector<8x128xf32>
    %117 = vector.broadcast %cst_36 : f32 to vector<8x128xf32>
    %118 = arith.select %114, %116, %117 : vector<8x128xi1>, vector<8x128xf32>
    %119 = vector.broadcast %94 : vector<1x128xi32> to vector<8x128xi32>
    %120 = arith.cmpi eq, %112, %119 : vector<8x128xi32>
    %cst_37 = arith.constant 0.000000e+00 : f32
    %121 = vector.shape_cast %83 : vector<1x128xf32> to vector<1x128xf32>
    %122 = vector.broadcast %121 : vector<1x128xf32> to vector<8x128xf32>
    %123 = vector.broadcast %cst_37 : f32 to vector<8x128xf32>
    %124 = arith.select %120, %122, %123 : vector<8x128xi1>, vector<8x128xf32>
    %125 = arith.addf %118, %124 : vector<8x128xf32>
    %126 = tpu.iota {dimensions = array<i32: 0>} : vector<8x128xi32>
    %127 = vector.broadcast %107 : vector<1x128xi32> to vector<8x128xi32>
    %128 = arith.cmpi eq, %126, %127 : vector<8x128xi32>
    %cst_38 = arith.constant 0.000000e+00 : f32
    %129 = vector.shape_cast %102 : vector<1x128xf32> to vector<1x128xf32>
    %130 = vector.broadcast %129 : vector<1x128xf32> to vector<8x128xf32>
    %131 = vector.broadcast %cst_38 : f32 to vector<8x128xf32>
    %132 = arith.select %128, %130, %131 : vector<8x128xi1>, vector<8x128xf32>
    %133 = vector.broadcast %111 : vector<1x128xi32> to vector<8x128xi32>
    %134 = arith.cmpi eq, %126, %133 : vector<8x128xi32>
    %cst_39 = arith.constant 0.000000e+00 : f32
    %135 = vector.shape_cast %100 : vector<1x128xf32> to vector<1x128xf32>
    %136 = vector.broadcast %135 : vector<1x128xf32> to vector<8x128xf32>
    %137 = vector.broadcast %cst_39 : f32 to vector<8x128xf32>
    %138 = arith.select %134, %136, %137 : vector<8x128xi1>, vector<8x128xf32>
    %139 = arith.addf %132, %138 : vector<8x128xf32>
    %140 = vector.shape_cast %139 : vector<8x128xf32> to vector<8x1x128xf32>
    %141 = vector.shape_cast %125 : vector<8x128xf32> to vector<1x8x128xf32>
    %142 = vector.broadcast %140 : vector<8x1x128xf32> to vector<8x8x128xf32>
    %143 = vector.broadcast %141 : vector<1x8x128xf32> to vector<8x8x128xf32>
    %144 = arith.mulf %142, %143 : vector<8x8x128xf32>
    %145 = vector.shape_cast %144 : vector<8x8x128xf32> to vector<64x128xf32>
    %c0_40 = arith.constant 0 : index
    %c0_41 = arith.constant 0 : index
    %c0_42 = arith.constant 0 : index
    %146 = vector.load %arg4[%c0_40, %c0_41, %c0_42] : memref<1x8x64xf32, #tpu.memory_space<vmem>>, vector<1x8x64xf32>
    %147 = vector.shape_cast %146 : vector<1x8x64xf32> to vector<8x64xf32>
    %cst_43 = arith.constant dense<0.000000e+00> : vector<8x128xf32>
    %148 = tpu.matmul %147, %145, %cst_43 {dimension_numbers = #tpu.dot_dimension_numbers<[1], [0], [0], [1], [0, 0, 1, 1], [], []>} : vector<8x64xf32>, vector<64x128xf32>, vector<8x128xf32> -> vector<8x128xf32>
    %c0_44 = arith.constant 0 : index
    %c0_45 = arith.constant 0 : index
    %c0_46 = arith.constant 0 : index
    %149 = vector.load %arg7[%c0_44, %c0_45, %c0_46] : memref<1x8x128xf32, #tpu.memory_space<vmem>>, vector<1x8x128xf32>
    %150 = vector.shape_cast %149 : vector<1x8x128xf32> to vector<8x128xf32>
    %151 = vector.shape_cast %148 : vector<8x128xf32> to vector<1x8x128xf32>
    tpu.vector_store %arg7[%c0_44, %c0_45, %c0_46], %151 {strides = array<i32>} : memref<1x8x128xf32, #tpu.memory_space<vmem>>, vector<1x8x128xf32>,
    %cst_47 = arith.constant 1.000000e+00 : f32
    %152 = vector.broadcast %cst_47 : f32 to vector<1x128xf32>
    %153 = arith.addf %2, %152 : vector<1x128xf32>
    %cst_48 = arith.constant 3.950000e+01 : f32
    %154 = vector.broadcast %cst_48 : f32 to vector<1x128xf32>
    %155 = arith.mulf %153, %154 : vector<1x128xf32>
    %156 = math.floor %155 : vector<1x128xf32>
    %157 = arith.subf %155, %156 : vector<1x128xf32>
    %cst_49 = arith.constant 1.000000e+00 : f32
    %158 = vector.broadcast %cst_49 : f32 to vector<1x128xf32>
    %159 = arith.subf %158, %157 : vector<1x128xf32>
    %160 = arith.fptosi %156 : vector<1x128xf32> to vector<1x128xi32>
    %c0_i32_50 = arith.constant 0 : i32
    %c79_i32 = arith.constant 79 : i32
    %161 = vector.broadcast %c0_i32_50 : i32 to vector<1x128xi32>
    %162 = arith.maxsi %161, %160 : vector<1x128xi32>
    %163 = vector.broadcast %c79_i32 : i32 to vector<1x128xi32>
    %164 = arith.minsi %163, %162 : vector<1x128xi32>
    %c1_i32_51 = arith.constant 1 : i32
    %165 = vector.broadcast %c1_i32_51 : i32 to vector<1x128xi32>
    %166 = arith.addi %164, %165 : vector<1x128xi32>
    %c79_i32_52 = arith.constant 79 : i32
    %167 = vector.broadcast %c79_i32_52 : i32 to vector<1x128xi32>
    %168 = arith.minsi %166, %167 : vector<1x128xi32>
    %cst_53 = arith.constant 1.000000e+00 : f32
    %169 = vector.broadcast %cst_53 : f32 to vector<1x128xf32>
    %170 = arith.addf %3, %169 : vector<1x128xf32>
    %cst_54 = arith.constant 1.550000e+01 : f32
    %171 = vector.broadcast %cst_54 : f32 to vector<1x128xf32>
    %172 = arith.mulf %170, %171 : vector<1x128xf32>
    %173 = math.floor %172 : vector<1x128xf32>
    %174 = arith.subf %172, %173 : vector<1x128xf32>
    %cst_55 = arith.constant 1.000000e+00 : f32
    %175 = vector.broadcast %cst_55 : f32 to vector<1x128xf32>
    %176 = arith.subf %175, %174 : vector<1x128xf32>
    %177 = arith.fptosi %173 : vector<1x128xf32> to vector<1x128xi32>
    %c0_i32_56 = arith.constant 0 : i32
    %c31_i32 = arith.constant 31 : i32
    %178 = vector.broadcast %c0_i32_56 : i32 to vector<1x128xi32>
    %179 = arith.maxsi %178, %177 : vector<1x128xi32>
    %180 = vector.broadcast %c31_i32 : i32 to vector<1x128xi32>
    %181 = arith.minsi %180, %179 : vector<1x128xi32>
    %c1_i32_57 = arith.constant 1 : i32
    %182 = vector.broadcast %c1_i32_57 : i32 to vector<1x128xi32>
    %183 = arith.addi %181, %182 : vector<1x128xi32>
    %c31_i32_58 = arith.constant 31 : i32
    %184 = vector.broadcast %c31_i32_58 : i32 to vector<1x128xi32>
    %185 = arith.minsi %183, %184 : vector<1x128xi32>
    %186 = tpu.iota {dimensions = array<i32: 0>} : vector<80x128xi32>
    %187 = vector.broadcast %164 : vector<1x128xi32> to vector<80x128xi32>
    %188 = arith.cmpi eq, %186, %187 : vector<80x128xi32>
    %cst_59 = arith.constant 0.000000e+00 : f32
    %189 = vector.shape_cast %159 : vector<1x128xf32> to vector<1x128xf32>
    %190 = vector.broadcast %189 : vector<1x128xf32> to vector<80x128xf32>
    %191 = vector.broadcast %cst_59 : f32 to vector<80x128xf32>
    %192 = arith.select %188, %190, %191 : vector<80x128xi1>, vector<80x128xf32>
    %193 = vector.broadcast %168 : vector<1x128xi32> to vector<80x128xi32>
    %194 = arith.cmpi eq, %186, %193 : vector<80x128xi32>
    %cst_60 = arith.constant 0.000000e+00 : f32
    %195 = vector.shape_cast %157 : vector<1x128xf32> to vector<1x128xf32>
    %196 = vector.broadcast %195 : vector<1x128xf32> to vector<80x128xf32>
    %197 = vector.broadcast %cst_60 : f32 to vector<80x128xf32>
    %198 = arith.select %194, %196, %197 : vector<80x128xi1>, vector<80x128xf32>
    %199 = arith.addf %192, %198 : vector<80x128xf32>
    %200 = tpu.iota {dimensions = array<i32: 0>} : vector<32x128xi32>
    %201 = vector.broadcast %181 : vector<1x128xi32> to vector<32x128xi32>
    %202 = arith.cmpi eq, %200, %201 : vector<32x128xi32>
    %cst_61 = arith.constant 0.000000e+00 : f32
    %203 = vector.shape_cast %176 : vector<1x128xf32> to vector<1x128xf32>
    %204 = vector.broadcast %203 : vector<1x128xf32> to vector<32x128xf32>
    %205 = vector.broadcast %cst_61 : f32 to vector<32x128xf32>
    %206 = arith.select %202, %204, %205 : vector<32x128xi1>, vector<32x128xf32>
    %207 = vector.broadcast %185 : vector<1x128xi32> to vector<32x128xi32>
    %208 = arith.cmpi eq, %200, %207 : vector<32x128xi32>
    %cst_62 = arith.constant 0.000000e+00 : f32
    %209 = vector.shape_cast %174 : vector<1x128xf32> to vector<1x128xf32>
    %210 = vector.broadcast %209 : vector<1x128xf32> to vector<32x128xf32>
    %211 = vector.broadcast %cst_62 : f32 to vector<32x128xf32>
    %212 = arith.select %208, %210, %211 : vector<32x128xi1>, vector<32x128xf32>
    %213 = arith.addf %206, %212 : vector<32x128xf32>
    %c0_63 = arith.constant 0 : index
    %c0_64 = arith.constant 0 : index
    %c0_65 = arith.constant 0 : index
    %214 = vector.load %arg5[%c0_63, %c0_64, %c0_65] : memref<1x64x80xf32, #tpu.memory_space<vmem>>, vector<1x64x80xf32>
    %215 = vector.shape_cast %214 : vector<1x64x80xf32> to vector<64x80xf32>
    %cst_66 = arith.constant dense<0.000000e+00> : vector<64x128xf32>
    %216 = tpu.matmul %215, %199, %cst_66 {dimension_numbers = #tpu.dot_dimension_numbers<[1], [0], [0], [1], [0, 0, 1, 1], [], []>} : vector<64x80xf32>, vector<80x128xf32>, vector<64x128xf32> -> vector<64x128xf32>
    %217 = vector.shape_cast %216 : vector<64x128xf32> to vector<2x32x128xf32>
    %218 = vector.shape_cast %213 : vector<32x128xf32> to vector<1x32x128xf32>
    %219 = vector.broadcast %218 : vector<1x32x128xf32> to vector<2x32x128xf32>
    %220 = arith.mulf %217, %219 : vector<2x32x128xf32>
    %cst_67 = arith.constant dense<0.000000e+00> : vector<2x128xf32>
    %221 = vector.multi_reduction <add>, %220, %cst_67 [1] : vector<2x32x128xf32> to vector<2x128xf32>
    %c0_68 = arith.constant 0 : index
    %c0_69 = arith.constant 0 : index
    %c0_70 = arith.constant 0 : index
    %222 = vector.load %arg8[%c0_68, %c0_69, %c0_70] : memref<1x2x128xf32, #tpu.memory_space<vmem>>, vector<1x2x128xf32>
    %223 = vector.shape_cast %222 : vector<1x2x128xf32> to vector<2x128xf32>
    %224 = vector.shape_cast %221 : vector<2x128xf32> to vector<1x2x128xf32>
    tpu.vector_store %arg8[%c0_68, %c0_69, %c0_70], %224 {strides = array<i32>} : memref<1x2x128xf32, #tpu.memory_space<vmem>>, vector<1x2x128xf32>,
    return
  }
  func.func @transform_0(%arg0: i32, %arg1: i32) -> (i32, i32, i32) {
    %c0_i32 = arith.constant 0 : i32
    %c0_i32_0 = arith.constant 0 : i32
    return %arg0, %c0_i32, %arg1 : i32, i32, i32
  }
  func.func @transform_1(%arg0: i32, %arg1: i32) -> (i32, i32, i32) {
    %c0_i32 = arith.constant 0 : i32
    %c0_i32_0 = arith.constant 0 : i32
    %c0_i32_1 = arith.constant 0 : i32
    return %arg0, %c0_i32, %c0_i32_0 : i32, i32, i32
  }
  func.func @transform_2(%arg0: i32, %arg1: i32) -> (i32, i32, i32) {
    %c0_i32 = arith.constant 0 : i32
    %c0_i32_0 = arith.constant 0 : i32
    %c0_i32_1 = arith.constant 0 : i32
    return %arg0, %c0_i32, %c0_i32_0 : i32, i32, i32
  }
  func.func @transform_3(%arg0: i32, %arg1: i32) -> (i32, i32, i32) {
    %c0_i32 = arith.constant 0 : i32
    %c0_i32_0 = arith.constant 0 : i32
    %c0_i32_1 = arith.constant 0 : i32
    return %arg0, %c0_i32, %c0_i32_0 : i32, i32, i32
  }
  func.func @transform_4(%arg0: i32, %arg1: i32) -> (i32, i32, i32) {
    %c0_i32 = arith.constant 0 : i32
    %c0_i32_0 = arith.constant 0 : i32
    return %arg0, %c0_i32, %arg1 : i32, i32, i32
  }
  func.func @transform_5(%arg0: i32, %arg1: i32) -> (i32, i32, i32) {
    %c0_i32 = arith.constant 0 : i32
    %c0_i32_0 = arith.constant 0 : i32
    return %arg0, %c0_i32, %arg1 : i32, i32, i32
  }
  func.func @transform_6(%arg0: i32, %arg1: i32) -> (i32, i32, i32) {
    %c0_i32 = arith.constant 0 : i32
    %c0_i32_0 = arith.constant 0 : i32
    return %arg0, %c0_i32, %arg1 : i32, i32, i32
  }
}

</mosaic_0001>

<bundles_post_ra>
// kernel: tpu_custom_call.1
= control target key start
LH: loop header
LB: loop body
LE: loop exit
PB: predicated region body
PF: predicated region fallthrough
CT: control target
= control target key end

     0   :  { %s2905_s0 = inlined_call_operand.hbm [shape: f32[2,2,128], index: 0, kind: input, shape index: {}]   ;;  %s2906_s1 = inlined_call_operand.hbm [shape: f32[2,4,256], index: 1, kind: input, shape index: {}]   ;;  %s2907_s2 = inlined_call_operand.hbm [shape: f32[2,8,64], index: 2, kind: input, shape index: {}]   ;;  %s2908_s3 = inlined_call_operand.hbm [shape: f32[2,64,80], index: 3, kind: input, shape index: {}]   ;;  %s2909_s4 = inlined_call_operand.hbm [shape: f32[2,4,128], index: 4, kind: output, shape index: {0}]   ;;  %s2910_s5 = inlined_call_operand.hbm [shape: f32[2,8,128], index: 5, kind: output, shape index: {1}]   ;;  %s2911_s6 = inlined_call_operand.hbm [shape: f32[2,2,128], index: 6, kind: output, shape index: {2}]  }
   0x1   :  { %2922 = sst [smem:[#allocation25_spill]] %s2906_s1 }
   0x2   :  { %12 = vsyncpa [#allocation3], 0 }
   0x3   :  { %14 = vsyncpa [#allocation3 + $0x1], 0 }
   0x4   :  { %15 = vsyncpa [#allocation6], 0 }
   0x5   :  { %17 = vsyncpa [#allocation6 + $0x1], 0 }
   0x6   :  { %18 = vsyncpa [#allocation9], 0 }
   0x7   :  { %20 = vsyncpa [#allocation9 + $0x1], 0 }
   0x8   :  { %21 = vsyncpa [#allocation4], 0 }
   0x9   :  { %23 = vsyncpa [#allocation4 + $0x1], 0 }
   0xa   :  { %24 = vsyncpa [#allocation12], 0 }
   0xb   :  { %26 = vsyncpa [#allocation12 + $0x1], 0  ;;  %s2208_s21 = smov 0   ;;  %s2210_s22 = smov 0  }
   0xc   :  { %s2212_s23 = smov 0   ;;  %s2214_s24 = smov 0  }
   0xd   :  { %s2216_s25 = smov 0   ;;  %s2218_s26 = smov 0  }
   0xe LB: > { %2923 = sst [smem:[#allocation19_spill]] %s2138_s21  ;;  %s2239_s27 = sadd.s32 4294967295, %s2158_s26   ;;  %s2158_s26 = sphi %s2218_s26, %s32_s26   ;;  %s2154_s25 = sphi %s2216_s25, %s2957_s25   ;;  %s2150_s24 = sphi %s2214_s24, %s2956_s24   ;;  %s2146_s23 = sphi %s2212_s23, %s2952_s23   ;;  %s2142_s22 = sphi %s2210_s22, %s2955_s22   ;;  %s2138_s21 = sphi %s2208_s21, %s2954_s21  }
   0xf   : > { %2924 = sst [smem:[#allocation20_spill]] %s2146_s23  ;;  %s2912_s28 = sadd.s32 4294967294, %s2158_s26  }
  0x10   : > { %2925 = sst [smem:[#allocation21_spill]] %s2158_s26  ;;  %s44_s29 = sadd.s32 1, %s2154_s25 }
  0x11   : > { %s53_s30 = sadd.s32 1, %s2146_s23  ;;  %p46_p0 = scmp.ge.s32.totalorder %s44_s29, 2 }
  0x12   : > { %p60_p1 = scmp.ne.s32.totalorder %s2146_s23, %s2142_s22  ;;  %p61_p2 = scmp.eq.s32.totalorder %s2158_s26, 0 }
  0x13   : > { %p66_p3 = scmp.ne.s32.totalorder %s2142_s22, %s2138_s21  ;;  %s2959_s29 = smov (%p46_p0, %s44_s29), 0 }
  0x14   : > { %2926 = sst [smem:[#allocation22_spill]] %s2959_s29  ;;  %p2251_p4 = por %p61_p2, %p60_p1 }
  0x15   : > { %p67_p5 = scmp.eq.s32.totalorder %s2239_s27, 0  ;;  %s48_s8 = ssub.s32 %s2154_s25, %s2959_s29 }
  0x16   : > { %p170_p6 = scmp.eq.s32.totalorder %s2239_s27, 1  ;;  %p51_p7 = scmp.eq.s32.totalorder %s48_s8, 0 }
  0x17   : > { %p2259_p8 = por %p67_p5, %p66_p3  ;;  %p176_p10 = scmp.eq.s32.totalorder %s2912_s28, 1 }
  0x18   : > { %p2263_p9 = por %p170_p6, %p60_p1  ;;  %p1831_p13 = scmp.lt.s32.totalorder %s2158_s26, 2 }
  0x19   : > { %s2928_s9 = scalar_select %p2259_p8, 1, 0 }
  0x1a   : > { %s2929_s10 = scalar_select %p2263_p9, 1, 0 }
  0x1b   : > { %s2270_s11 = scalar_select %p51_p7, %s2146_s23, %s53_s30  }
  0x1c   : > { %p2272_p11 = por %p176_p10, %p66_p3  ;;  %s2279_s13 = sand.u32 1, %s2146_s23  }
  0x1d   : > { %2930 = sst [smem:[#allocation23_spill]] %s2270_s11  ;;  %s271_s14 = sand.u32 1, %s2158_s26  }
  0x1e   : > { %s2931_s12 = scalar_select %p2272_p11, 1, 0 }
  0x1f   : > { %s2915_s15 = sshll.u32 %s2279_s13, 3  ;;  %p2285_p0 = pnand %p1831_p13, %p2251_p4 }
  0x20   : > { %2932 = sst [smem:[#allocation24_spill]] %s2931_s12  ;;  %s1607_s17 = sshll.u32 %s2154_s25, 7 }
  0x21   : > { %s2934_s1 = sld [smem:[#allocation25_spill]]  ;;  %s275_s30 = scalar_lea.vmem [#allocation5], %s2915_s15 }
  0x22   : > { %s283_s8 = sshll.u32 %s275_s30, 4  ;;  %s2302_s29 = scalar_lea.hbm %s2907_s2, %s1607_s17  ;;  %s2297_s8 = int_to_ptr.vmem [resolvable:$true] %s283_s8 }
  0x23   : > { %s2304_s11 = scalar_lea.sflag [#allocation6], %s271_s14  ;;  %p2310_p2 = pneg %p2285_p0 }
  0x27   : > { %s2293_s20 = scalar_lea.hbm %s2934_s1, %s1607_s17  ;;  %s1893_s15 = scalar_lea.hbm %s2934_s1, 256 }
  0x28   : > { %s1888_s23 = scalar_lea.hbm %s2293_s20, 128  ;;  %p1894_p5 = scmp.lt.u32.totalorder %s2293_s20, %s2934_s1 }
  0x29   : > { %p1889_p1 = scmp.ne.s32.totalorder %s2293_s20, %s1888_s23  ;;  %p1895_p6 = scmp.lt.u32.totalorder %s1893_s15, %s1888_s23 }
  0x2a   : > { %p1897_p10 = scmp.lt.u32.totalorder %s1888_s23, %s2293_s20 }
  0x2b   : > { %p1891_p3 = pnand %p2310_p2, %p1889_p1  ;;  %p1896_p7 = por %p1895_p6, %p1894_p5 }
  0x2d   : > { %p1892_p4 = pneg %p1891_p3  ;;  %p1898_p13 = por %p1897_p10, %p1896_p7 }
  0x2f   : > { %p1899_p12 = pnand %p1898_p13, %p1892_p4 }
  0x31   : > { %1902 = shalt.err (!%p1899_p12)
}
  0x32   : > { %s1903_s14 = scalar_lea.vmem %s2297_s8, 128  ;;  %s2160_s7 = smov [#allocation5]  }
  0x33   : > { %p1904_p1 = scmp.ne.s32.totalorder %s2297_s8, %s1903_s14  ;;  %s1908_s19 = sshll.u32 %s2160_s7, 4  ;;  %s1909_s19 = int_to_ptr.vmem [resolvable:$false] %s1908_s19 }
  0x34   : > { %s1910_s30 = scalar_lea.vmem %s1909_s19, 256  ;;  %p1911_p9 = scmp.lt.s32.totalorder %s2297_s8, %s1909_s19 }
  0x35   : > { %p1906_p3 = pnand %p1904_p1, %p2310_p2  ;;  %p1912_p8 = scmp.lt.s32.totalorder %s1910_s30, %s1903_s14 }
  0x37   : > { %p1907_p11 = pneg %p1906_p3  ;;  %p1913_p5 = por %p1912_p8, %p1911_p9 }
  0x39   : > { %p1914_p6 = pnand %p1913_p5, %p1907_p11 }
  0x3b   : > { %1917 = shalt.err (!%p1914_p6)
}
  0x3c   : > { %1814 = dma.hbm_to_vmem [thread:$0]  (!%p2285_p0), %s2293_s20, 128, %s2297_s8, %s2304_s11  }
  0x3d   : > { %p1582_p12 = scmp.ge.s32.totalorder %s2158_s26, 1  ;;  %p327_p4 = scmp.lt.s32.totalorder %s2158_s26, 3 }
  0x3e   : > { %s1572_s15 = sshll.u32 %s2279_s13, 1  ;;  %s1573_s28 = sshll.u32 %s2154_s25, 5 }
  0x3f   : > { %p2336_p7 = pnand %p1582_p12, %p327_p4  ;;  %s2345_s7 = scalar_lea.hbm %s2905_s0, %s1573_s28 }
  0x40   : > { %s256_s19 = scalar_lea.vmem [#allocation2], %s1572_s15  ;;  %s2937_s8 = sshll.u32 %s2279_s13, 3 }
  0x41   : > { %s2936_s23 = scalar_select %p2336_p7, 1, 0 }
  0x42   : > { %s264_s20 = sshll.u32 %s256_s19, 4  ;;  %s294_s30 = scalar_lea.vmem [#allocation7], %s2937_s8  ;;  %s2349_s20 = int_to_ptr.vmem [resolvable:$true] %s264_s20 }
  0x43   : > { %s301_s1 = sshll.u32 %s294_s30, 4  ;;  %s253_s26 = scalar_lea.sflag [#allocation3], %s2279_s13  ;;  %s2351_s1 = int_to_ptr.vmem [resolvable:$true] %s301_s1 }
  0x44   : > { %s1918_s12 = scalar_lea.hbm %s2345_s7, 32  ;;  %s1923_s14 = scalar_lea.hbm %s2905_s0, 64 }
  0x45   : > { %p1919_p8 = scmp.ne.s32.totalorder %s2345_s7, %s1918_s12  ;;  %p1924_p10 = scmp.lt.u32.totalorder %s2345_s7, %s2905_s0 }
  0x46   : > { %p1925_p13 = scmp.lt.u32.totalorder %s1923_s14, %s1918_s12  ;;  %p1927_p3 = scmp.lt.u32.totalorder %s1918_s12, %s2345_s7 }
  0x47   : > { %p1921_p9 = pnand %p1919_p8, %p2310_p2 }
  0x48   : > { %p1926_p1 = por %p1925_p13, %p1924_p10 }
  0x49   : > { %p1922_p11 = pneg %p1921_p9 }
  0x4a   : > { %p1928_p5 = por %p1927_p3, %p1926_p1 }
  0x4c   : > { %p1929_p6 = pnand %p1928_p5, %p1922_p11 }
  0x4e   : > { %1932 = shalt.err (!%p1929_p6)
}
  0x4f   : > { %s1933_s19 = scalar_lea.vmem %s2349_s20, 32  ;;  %s2161_s8 = smov [#allocation2]  }
  0x50   : > { %p1934_p12 = scmp.ne.s32.totalorder %s2349_s20, %s1933_s19  ;;  %s1938_s30 = sshll.u32 %s2161_s8, 4  ;;  %s1939_s30 = int_to_ptr.vmem [resolvable:$false] %s1938_s30 }
  0x51   : > { %s1940_s21 = scalar_lea.vmem %s1939_s30, 64  ;;  %p1941_p9 = scmp.lt.s32.totalorder %s2349_s20, %s1939_s30 }
  0x52   : > { %p1936_p4 = pnand %p1934_p12, %p2310_p2  ;;  %p1942_p7 = scmp.lt.s32.totalorder %s1940_s21, %s1933_s19 }
  0x54   : > { %p1937_p8 = pneg %p1936_p4  ;;  %p1943_p10 = por %p1942_p7, %p1941_p9 }
  0x56   : > { %p1944_p13 = pnand %p1943_p10, %p1937_p8 }
  0x58   : > { %1947 = shalt.err (!%p1944_p13)
}
  0x59   : > { %1811 = dma.hbm_to_vmem [thread:$0]  (!%p2285_p0), %s2345_s7, 32, %s2349_s20, %s253_s26  }
  0x5a   : > { %s1948_s12 = scalar_lea.hbm %s2302_s29, 128  ;;  %s1953_s14 = scalar_lea.hbm %s2907_s2, 256 }
  0x5b   : > { %p1949_p11 = scmp.ne.s32.totalorder %s2302_s29, %s1948_s12  ;;  %p1954_p7 = scmp.lt.u32.totalorder %s2302_s29, %s2907_s2 }
  0x5c   : > { %p1955_p5 = scmp.lt.u32.totalorder %s1953_s14, %s1948_s12  ;;  %p1957_p12 = scmp.lt.u32.totalorder %s1948_s12, %s2302_s29 }
  0x5d   : > { %p1951_p1 = pnand %p1949_p11, %p2310_p2 }
  0x5e   : > { %p1956_p6 = por %p1955_p5, %p1954_p7 }
  0x5f   : > { %p1952_p3 = pneg %p1951_p1 }
  0x60   : > { %p1958_p4 = por %p1957_p12, %p1956_p6 }
  0x62   : > { %p1959_p8 = pnand %p1958_p4, %p1952_p3 }
  0x64   : > { %1962 = shalt.err (!%p1959_p8)
}
  0x65   : > { %s1963_s26 = scalar_lea.vmem %s2351_s1, 128  ;;  %s2162_s7 = smov [#allocation7]  }
  0x66   : > { %p1964_p9 = scmp.ne.s32.totalorder %s2351_s1, %s1963_s26  ;;  %s1968_s20 = sshll.u32 %s2162_s7, 4  ;;  %s1969_s20 = int_to_ptr.vmem [resolvable:$false] %s1968_s20 }
  0x67   : > { %s1970_s8 = scalar_lea.vmem %s1969_s20, 256  ;;  %p1971_p11 = scmp.lt.s32.totalorder %s2351_s1, %s1969_s20 }
  0x68   : > { %p1966_p10 = pnand %p1964_p9, %p2310_p2  ;;  %p1972_p1 = scmp.lt.s32.totalorder %s1970_s8, %s1963_s26 }
  0x6a   : > { %p1967_p13 = pneg %p1966_p10  ;;  %p1973_p7 = por %p1972_p1, %p1971_p11 }
  0x6c   : > { %p1974_p5 = pnand %p1973_p7, %p1967_p13 }
  0x6e   : > { %1977 = shalt.err (!%p1974_p5)
}
  0x6f   : > { %1817 = dma.hbm_to_vmem [thread:$0]  (!%p2285_p0), %s2302_s29, 128, %s2351_s1, %s2304_s11  }
  0x70   : > { %s1579_s30 = sshll.u32 %s2279_s13, 6  ;;  %s1608_s21 = sshll.u32 %s2154_s25, 10 }
  0x71   : > { %s2402_s17 = scalar_lea.hbm %s2908_s3, %s1608_s21  ;;  %s312_s14 = scalar_lea.vmem [#allocation8], %s1579_s30 }
  0x72   : > { %s319_s15 = sshll.u32 %s312_s14, 4  ;;  %s309_s19 = scalar_lea.sflag [#allocation9], %s2279_s13  ;;  %s2404_s15 = int_to_ptr.vmem [resolvable:$true] %s319_s15 }
  0x73   : > { %s1978_s26 = scalar_lea.hbm %s2402_s17, 1024  ;;  %s1983_s11 = scalar_lea.hbm %s2908_s3, 2048 }
  0x74   : > { %p1979_p3 = scmp.ne.s32.totalorder %s2402_s17, %s1978_s26  ;;  %p1984_p4 = scmp.lt.u32.totalorder %s2402_s17, %s2908_s3 }
  0x75   : > { %p1985_p8 = scmp.lt.u32.totalorder %s1983_s11, %s1978_s26  ;;  %p1987_p10 = scmp.lt.u32.totalorder %s1978_s26, %s2402_s17 }
  0x76   : > { %p1981_p6 = pnand %p1979_p3, %p2310_p2 }
  0x77   : > { %p1986_p9 = por %p1985_p8, %p1984_p4 }
  0x78   : > { %p1982_p12 = pneg %p1981_p6 }
  0x79   : > { %p1988_p13 = por %p1987_p10, %p1986_p9 }
  0x7b   : > { %p1989_p11 = pnand %p1988_p13, %p1982_p12 }
  0x7d   : > { %1992 = shalt.err (!%p1989_p11)
}
  0x7e   : > { %s1993_s8 = scalar_lea.vmem %s2404_s15, 1024  ;;  %s2163_s30 = smov [#allocation8]  }
  0x7f   : > { %p1994_p1 = scmp.ne.s32.totalorder %s2404_s15, %s1993_s8  ;;  %s1998_s21 = sshll.u32 %s2163_s30, 4  ;;  %s1999_s21 = int_to_ptr.vmem [resolvable:$false] %s1998_s21 }
  0x80   : > { %s2000_s12 = scalar_lea.vmem %s1999_s21, 2048  ;;  %p2001_p3 = scmp.lt.s32.totalorder %s2404_s15, %s1999_s21 }
  0x81   : > { %p1996_p7 = pnand %p1994_p1, %p2310_p2  ;;  %p2002_p6 = scmp.lt.s32.totalorder %s2000_s12, %s1993_s8 }
  0x83   : > { %p1997_p5 = pneg %p1996_p7  ;;  %p2003_p4 = por %p2002_p6, %p2001_p3 }
  0x85   : > { %p2004_p8 = pnand %p2003_p4, %p1997_p5 }
  0x87   : > { %2007 = shalt.err (!%p2004_p8)
}
  0x88   : > { %s2164_s28 = smov 128   ;;  %s2165_s14 = smov 8  }
  0x89   : > { %1820 = dma.hbm_to_vmem [thread:$0]  (!%p2285_p0), %s2402_s17, 1024, %s2404_s15, %s309_s19, %s2164_s28, %s2164_s28, %s2165_s14  }
  0x8a   : > { %p2938_p2 = scmp.ne.s32.totalorder %s2936_s23, 0 }
  0x8b   : > { %s2433_s18 = sand.u32 (!%p2938_p2), 1, %s2142_s22   ;;  %p2939_p12 = scmp.ne.s32.totalorder (!%p2938_p2), %s2928_s9, 0 }
  0x8c   : > { %331 = sbr.rel (%p2938_p2) target bundleno = 501 (0x1f5), region = 36  ;;  %s1583_s26 = sshll.u32 (!%p2938_p2), %s2433_s18, 1 }
  0x8d   : > { %s334_s1 = scalar_lea.sflag (!%p2938_p2), [#allocation3], %s2433_s18  ;;  %s337_s29 = scalar_lea.vmem (!%p2938_p2), [#allocation2], %s1583_s26 }
  0x93   : > { %2117 = dma.done.wait (%p2939_p12), %s334_s1, 32  }
  0x94   : > { %2119 = vsyncadd (%p2939_p12), %s334_s1, 4294967264  ;;  %s342_s13 = sand.u32 1, %s2239_s27   ;;  %s2445_s16 = sshll.u32 %s2433_s18, 3 }
  0x95   : > { %s343_s23 = scalar_lea.sflag [#allocation6], %s342_s13  ;;  %s346_s17 = scalar_lea.vmem [#allocation5], %s2445_s16 }
  0x96   : > { %2121 = dma.done.wait (%p2939_p12), %s343_s23, 256  }
  0x97   : > { %2123 = vsyncadd (%p2939_p12), %s343_s23, 4294967040  ;;  %s1586_s15 = sshll.u32 %s2433_s18, 6  ;;  %s355_s19 = scalar_lea.vmem [#allocation7], %s2445_s16 }
  0x98   : > { %s361_s11 = scalar_lea.sflag [#allocation9], %s2433_s18  ;;  %s2457_s7 = scalar_lea.vmem [#allocation8], %s1586_s15 }
  0x99   : > { %2125 = dma.done.wait (%p2939_p12), %s361_s11, 1024  }
  0x9a   : > { %2127 = vsyncadd (%p2939_p12), %s361_s11, 4294966272  ;;  %v2166_v0 = vmov 0.0|0.0   ;;  %vm2167_vm0 = vmmov 0   ;;  %v2168_v1 = vmov 0.0   ;;  %v432_v2 = vlaneseq  ;;  %v418_v3 = vld [vmem:[%s337_s29] sm:$0x3] }
  0x9b   : > { %1754 = vmatprep.subr.bf16.mxu1 %v2166_v0  ;;  %1687 = vmatprep.mubr.msk.f32.mxu1 %vm2167_vm0, %v2168_v1  ;;  %v2169_v4 = vmov 1966171168   ;;  %v2464_v6 = vadd.f32 1.0, %v418_v3  ;;  %v2471_v11 = vld [vmem:[%s346_s17] sm:$0xff]  ;;  %s410_s9 = scalar_lea.vmem [#allocation11], %s2445_s16  ;;  %s1603_s8 = sshll.u32 %s2150_s24, 7 }
  0x9c   : > { %v491_v5 = vunpack.c.l.s4 %v2169_v4  ;;  %v2466_v7 = vshrl.u32 %v432_v2, 7  ;;  %v701_v13 = vcombine.high %v2471_v11, %v2471_v11  ;;  %s1345_s20 = sshll.u32 %s410_s9, 4  ;;  %s2776_s12 = scalar_lea.hbm %s2910_s5, %s1603_s8  ;;  %s2771_s20 = int_to_ptr.vmem [resolvable:$true] %s1345_s20 }
  0x9d   : > { %v774_v8 = vmul.f32 3.5, %v2464_v6  ;;  %v1002_v9 = vmul.f32 39.5, %v2464_v6  ;;  %v420_v10 = vmul.f32 7.5, %v2464_v6  ;;  %s2780_s28 = scalar_lea.sflag [#allocation12], %s342_s13  ;;  %s2008_s14 = scalar_lea.vmem %s2771_s20, 128 }
  0x9e   : > { %v492_v12 = vunpack.c.0.s8 %v491_v5  ;;  %v2476_v17 = vsub.s32 0, %v2466_v7  ;;  %v2479_v18 = vsub.s32 1, %v2466_v7  ;;  %767 = vmatprep.mubr.f32.mxu0 %v701_v13  ;;  %v2484_v22 = vadd.s32 8, %v2466_v7  ;;  %p2009_p0 = scmp.ne.s32.totalorder %s2771_s20, %s2008_s14  ;;  %p2944_p9 = scmp.ne.s32.totalorder %s2929_s10, 0 }
  0x9f   : > { %v775_v14 = vfloor.f32 %v774_v8  ;;  %v1003_v15 = vfloor.f32 %v1002_v9  ;;  %v421_v16 = vfloor.f32 %v420_v10  ;;  %v2490_v24 = vadd.s32 16, %v2466_v7  ;;  %s2170_s1 = smov [#allocation11]  }
  0xa0   : > { %v2487_v23 = vsub.s32 %v492_v12, %v2466_v7  ;;  %v2493_v25 = vadd.s32 24, %v2466_v7  ;;  %v2496_v26 = vadd.s32 32, %v2466_v7  ;;  %v2499_v29 = vadd.s32 40, %v2466_v7  ;;  %p2010_p10 = pnand %p2009_p0, %p2944_p9  ;;  %s2012_s29 = sshll.u32 %s2170_s1, 4  ;;  %s2013_s29 = int_to_ptr.vmem [resolvable:$false] %s2012_s29 }
  0xa1   : > { %v2481_v19 = vsub.f32 %v774_v8, %v775_v14  ;;  %v1788_v20 = vtrunc.f32 %v775_v14  ;;  %v1790_v21 = vtrunc.f32 %v1003_v15  ;;  %v1004_v28 = vsub.f32 %v1002_v9, %v1003_v15  ;;  %s2014_s16 = scalar_lea.vmem %s2013_s29, 256  ;;  %p2015_p11 = scmp.lt.s32.totalorder %s2771_s20, %s2013_s29 }
  0xa2   : > { %v1786_v30 = vtrunc.f32 %v421_v16  ;;  %v2502_v32 = vadd.s32 48, %v2466_v7  ;;  %v2505_v33 = vadd.s32 56, %v2466_v7  ;;  %v2507_v34 = vsub.f32 %v420_v10, %v421_v16  ;;  %p2011_p13 = pneg %p2010_p10  ;;  %p2016_p1 = scmp.lt.s32.totalorder %s2014_s16, %s2008_s14 }
  0xa3   : > { %v1789_v27 = vcvt.f32.s32 %v1788_v20  ;;  %v1791_v31 = vcvt.f32.s32 %v1790_v21  ;;  %v777_v35 = vsub.f32 1.0, %v2481_v19  ;;  %v2511_v36 = vadd.s32 64, %v2466_v7 }
  0xa4   : > { %v2514_v37 = vadd.s32 72, %v2466_v7  ;;  %v804_v39 = vrot.slane %v2481_v19, %v2476_v17  ;;  %v825_v40 = vrot.slane %v2481_v19, %v2479_v18  ;;  %v1005_v41 = vsub.f32 1.0, %v1004_v28  ;;  %p2017_p7 = por %p2016_p1, %p2015_p11 }
  0xa5   : > { %vm779_vm1 = vcmp.gt.s32.totalorder %v1789_v27, 0  ;;  %vm1007_vm2 = vcmp.gt.s32.totalorder %v1791_v31, 0  ;;  %v1787_v43 = vcvt.f32.s32 %v1786_v30  ;;  %v2521_v45 = vrot.slane %v1004_v28, %v2476_v17 }
  0xa6   : > { %v780_v38 = vsel %vm779_vm1, %v1789_v27, 0  ;;  %v1008_v42 = vsel %vm1007_vm2, %v1791_v31, 0  ;;  %v423_v46 = vsub.f32 1.0, %v2507_v34  ;;  %v794_v51 = vrot.slane %v777_v35, %v2476_v17  ;;  %p2018_p5 = pnand %p2017_p7, %p2011_p13 }
  0xa7   : > { %vm781_vm3 = vcmp.lt.s32.totalorder %v780_v38, 7  ;;  %vm1009_vm4 = vcmp.lt.s32.totalorder %v1008_v42, 79  ;;  %v815_v52 = vrot.slane %v777_v35, %v2479_v18  ;;  %v2537_v56 = vrot.slane %v1005_v41, %v2476_v17 }
  0xa8   : > { %v782_v44 = vsel %vm781_vm3, %v780_v38, 7  ;;  %v1010_v50 = vsel %vm1009_vm4, %v1008_v42, 79  ;;  %vm425_vm7 = vcmp.gt.s32.totalorder %v1787_v43, 0  ;;  %v2545_v59 = vrot.slane %v423_v46, %v2476_v17 }
  0xa9   : > { %v783_v47 = vadd.s32 1, %v782_v44  ;;  %v789_v48 = vrot.slane %v782_v44, %v2476_v17  ;;  %v810_v49 = vrot.slane %v782_v44, %v2479_v18  ;;  %v1011_v53 = vadd.s32 1, %v1010_v50 }
  0xaa   : > { %v2529_v54 = vrot.slane %v1010_v50, %v2476_v17  ;;  %v426_v2 = vsel %vm425_vm7, %v1787_v43, 0  ;;  %v2574_v14 = vrot.slane %v2507_v34, %v2476_v17  ;;  %v2577_v15 = vrot.slane %v423_v46, %v2479_v18 }
  0xab   : > { %vm784_vm5 = vcmp.lt.s32.totalorder %v783_v47, 7  ;;  %vm2532_vm6 = vcmp.eq.s32.totalorder %v2466_v7, %v810_v49  ;;  %vm2540_vm8 = vcmp.eq.s32.totalorder %v2466_v7, %v789_v48  ;;  %vm1012_vm9 = vcmp.lt.s32.totalorder %v1011_v53, 79 }
  0xac   : > { %v785_v57 = vsel %vm784_vm5, %v783_v47, 7  ;;  %v1013_v62 = vsel %vm1012_vm9, %v1011_v53, 79  ;;  %vm1038_vm10 = vcmp.eq.s32.totalorder %v2466_v7, %v2529_v54  ;;  %v816_v63 = vsel %vm2532_vm6, %v815_v52, 0.0 }
  0xad   : > { %v799_v60 = vrot.slane %v785_v57, %v2476_v17  ;;  %v820_v61 = vrot.slane %v785_v57, %v2479_v18  ;;  %v2554_v1 = vrot.slane %v1013_v62, %v2476_v17  ;;  %vm1039_vm11 = vcmp.eq.s32.totalorder %v2484_v22, %v2529_v54 }
  0xae   : > { %v795_v3 = vsel %vm2540_vm8, %v794_v51, 0.0  ;;  %v1052_v4 = vsel %vm1038_vm10, %v2537_v56, 0.0  ;;  %v1053_v8 = vsel %vm1039_vm11, %v2537_v56, 0.0  ;;  %vm1040_vm0 = vcmp.eq.s32.totalorder %v2490_v24, %v2529_v54 }
  0xaf   : > { %vm800_vm12 = vcmp.eq.s32.totalorder %v2466_v7, %v799_v60  ;;  %vm821_vm13 = vcmp.eq.s32.totalorder %v2466_v7, %v820_v61  ;;  %vm1066_vm14 = vcmp.eq.s32.totalorder %v2466_v7, %v2554_v1  ;;  %vm1067_vm15 = vcmp.eq.s32.totalorder %v2484_v22, %v2554_v1 }
  0xb0   : > { %v826_v5 = vsel %vm821_vm13, %v825_v40, 0.0  ;;  %v805_v9 = vsel %vm800_vm12, %v804_v39, 0.0  ;;  %v1080_v12 = vsel %vm1066_vm14, %v2521_v45, 0.0  ;;  %v1081_v13 = vsel %vm1067_vm15, %v2521_v45, 0.0 }
  0xb1   : > { %v827_v10 = vadd.f32 %v826_v5, %v816_v63  ;;  %vm427_vm1 = vcmp.lt.s32.totalorder %v426_v2, 15  ;;  %vm1041_vm2 = vcmp.eq.s32.totalorder %v2493_v25, %v2529_v54  ;;  %vm1068_vm3 = vcmp.eq.s32.totalorder %v2490_v24, %v2554_v1 }
  0xb2   : > { %v806_v20 = vadd.f32 %v805_v9, %v795_v3  ;;  %v1090_v21 = vadd.f32 %v1080_v12, %v1052_v4  ;;  %v1091_v27 = vadd.f32 %v1081_v13, %v1053_v8  ;;  %v2586_v28 = vrot.slane %v2507_v34, %v2479_v18 }
  0xb3   : > { %v829_v16 = vcombine.high %v827_v10, %v827_v10  ;;  %v836_v19 = vrot.slane %v827_v10, %v2487_v23  ;;  %vm1069_vm4 = vcmp.eq.s32.totalorder %v2493_v25, %v2554_v1  ;;  %v1054_v38 = vsel %vm1040_vm0, %v2537_v56, 0.0 }
  0xb4   : > { %v1055_v39 = vsel %vm1041_vm2, %v2537_v56, 0.0  ;;  %v1082_v40 = vsel %vm1068_vm3, %v2521_v45, 0.0  ;;  %v428_v34 = vsel %vm427_vm1, %v426_v2, 15  ;;  %v2602_v47 = vpack.c.bf16 %v1091_v27, %v1090_v21 }
  0xb5   : > { %v844_v30 = vcombine.high %v836_v19, %v836_v19  ;;  %v852_v31 = vrot.slane %v836_v19, %v2487_v23  ;;  %v843_v35 = vrot.slane %v829_v16, %v2487_v23  ;;  %v1083_v48 = vsel %vm1069_vm4, %v2521_v45, 0.0 }
  0xb6   : > { %vm1042_vm5 = vcmp.eq.s32.totalorder %v2496_v26, %v2529_v54  ;;  %v1092_v58 = vadd.f32 %v1082_v40, %v1054_v38  ;;  %vm1043_vm6 = vcmp.eq.s32.totalorder %v2499_v29, %v2529_v54  ;;  %vm1070_vm7 = vcmp.eq.s32.totalorder %v2496_v26, %v2554_v1 }
  0xb7   : > { %v866_v41 = vrot.slane %v844_v30, %v2487_v23  ;;  %v874_v42 = vcombine.high %v852_v31, %v852_v31  ;;  %v881_v43 = vrot.slane %v852_v31, %v2476_v17  ;;  %v845_v44 = vcombine.high %v843_v35, %v843_v35 }
  0xb8   : > { %v859_v46 = vrot.slane %v843_v35, %v2487_v23  ;;  %v1093_v8 = vadd.f32 %v1083_v48, %v1055_v39  ;;  %vm1071_vm8 = vcmp.eq.s32.totalorder %v2499_v29, %v2554_v1  ;;  %v1056_v13 = vsel %vm1042_vm5, %v2537_v56, 0.0 }
  0xb9   : > { %v876_v49 = vcombine.high %v866_v41, %v866_v41  ;;  %v885_v50 = vrot.slane %v866_v41, %v2476_v17  ;;  %v918_v51 = vmul.f32 %v881_v43, %v806_v20  ;;  %v889_v52 = vrot.slane %v874_v42, %v2476_v17 }
  0xba   : > { %v873_v53 = vrot.slane %v845_v44, %v2487_v23  ;;  %v897_v55 = vrot.slane %v859_v46, %v2476_v17  ;;  %v875_v57 = vcombine.high %v859_v46, %v859_v46  ;;  %v1057_v19 = vsel %vm1043_vm6, %v2537_v56, 0.0 }
  0xbb   : > { %v919_v60 = vmul.f32 %v885_v50, %v806_v20  ;;  %v893_v61 = vrot.slane %v876_v49, %v2476_v17  ;;  %v920_v62 = vmul.f32 %v889_v52, %v806_v20  ;;  %v1084_v21 = vsel %vm1070_vm7, %v2521_v45, 0.0 }
  0xbc   : > { %v901_v63 = vrot.slane %v873_v53, %v2476_v17  ;;  %v877_v2 = vcombine.high %v873_v53, %v873_v53  ;;  %v905_v3 = vrot.slane %v875_v57, %v2476_v17  ;;  %v922_v9 = vmul.f32 %v897_v55, %v806_v20 }
  0xbd   : > { %v1755_v4 = vpack.c.bf16 %v919_v60, %v918_v51  ;;  %v921_v5 = vmul.f32 %v893_v61, %v806_v20  ;;  %vm1044_vm9 = vcmp.eq.s32.totalorder %v2502_v32, %v2529_v54  ;;  %v1085_v27 = vsel %vm1071_vm8, %v2521_v45, 0.0 }
  0xbe   : > { %v923_v10 = vmul.f32 %v901_v63, %v806_v20  ;;  %v909_v12 = vrot.slane %v877_v2, %v2476_v17  ;;  %v924_v29 = vmul.f32 %v905_v3, %v806_v20  ;;  %vm1045_vm10 = vcmp.eq.s32.totalorder %v2505_v33, %v2529_v54 }
  0xbf   : > { %1756 = vmatpush3.bf16.msra.mxu1 %v1755_v4  ;;  %v1758_v16 = vpack.c.bf16 %v921_v5, %v920_v62  ;;  %vm1072_vm11 = vcmp.eq.s32.totalorder %v2502_v32, %v2554_v1  ;;  %vm1073_vm12 = vcmp.eq.s32.totalorder %v2505_v33, %v2554_v1  ;;  %v429_v30 = vadd.s32 1, %v428_v34 }
  0xc0   : > { %1757 = vmatprep.subr.bf16.mxu1 %v2166_v0  ;;  %v925_v26 = vmul.f32 %v909_v12, %v806_v20  ;;  %v438_v31 = vrot.slane %v428_v34, %v2476_v17  ;;  %v1761_v35 = vpack.c.bf16 %v923_v10, %v922_v9  ;;  %v2638_v38 = vpack.c.bf16 %v1093_v8, %v1092_v58  ;;  %v1136_v8 = vld [vmem:[%s2457_s7] sm:$0xff] }
  0xc1   : > { %v1058_v39 = vsel %vm1044_vm9, %v2537_v56, 0.0  ;;  %v464_v40 = vrot.slane %v428_v34, %v2479_v18  ;;  %vm927_vm13 = vcmask 523264   ;;  %v1059_v41 = vsel %vm1045_vm10, %v2537_v56, 0.0 }
  0xc2   : > { %v1086_v32 = vsel %vm1072_vm11, %v2521_v45, 0.0  ;;  %v1087_v20 = vsel %vm1073_vm12, %v2521_v45, 0.0  ;;  %vm430_vm14 = vcmp.lt.s32.totalorder %v429_v30, 15  ;;  %v1094_v33 = vadd.f32 %v1084_v21, %v1056_v13 }
  0xc3   : > { %1759 = vmatpush3.bf16.msra.mxu1 %v1758_v16  ;;  %v1095_v42 = vadd.f32 %v1085_v27, %v1057_v19  ;;  %v431_v43 = vsel %vm430_vm14, %v429_v30, 15  ;;  %vm466_vm15 = vcmp.eq.s32.totalorder %v2484_v22, %v464_v40  ;;  %v1764_v44 = vpack.c.bf16 %v925_v26, %v924_v29 }
  0xc4   : > { %1760 = vmatprep.subr.bf16.mxu1 %v2166_v0  ;;  %vm439_vm0 = vcmp.eq.s32.totalorder %v2466_v7, %v438_v31  ;;  %v450_v34 = vrot.slane %v431_v43, %v2476_v17  ;;  %v476_v46 = vrot.slane %v431_v43, %v2479_v18  ;;  %vm1144_vm1 = vcmask 654336  }
  0xc5   : > { %v1096_v48 = vadd.f32 %v1086_v32, %v1058_v39  ;;  %v1097_v49 = vadd.f32 %v1087_v20, %v1059_v41  ;;  %vm440_vm2 = vcmp.eq.s32.totalorder %v2484_v22, %v438_v31  ;;  %v472_v50 = vsel %vm466_vm15, %v2577_v15, 0.0 }
  0xc6   : > { %vm451_vm3 = vcmp.eq.s32.totalorder %v2466_v7, %v450_v34  ;;  %vm452_vm4 = vcmp.eq.s32.totalorder %v2484_v22, %v450_v34  ;;  %vm478_vm5 = vcmp.eq.s32.totalorder %v2484_v22, %v476_v46  ;;  %vm1046_vm6 = vcmp.eq.s32.totalorder %v2511_v36, %v2529_v54 }
  0xc7   : > { %1762 = vmatpush3.bf16.msra.mxu1 %v1761_v35  ;;  %v445_v51 = vsel %vm439_vm0, %v2545_v59, 0.0  ;;  %v457_v52 = vsel %vm451_vm3, %v2574_v14, 0.0  ;;  %v484_v53 = vsel %vm478_vm5, %v2586_v28, 0.0  ;;  %vm1047_vm7 = vcmp.eq.s32.totalorder %v2514_v37, %v2529_v54 }
  0xc8   : > { %1763 = vmatprep.subr.bf16.mxu1 %v2166_v0  ;;  %v446_v55 = vsel %vm440_vm2, %v2545_v59, 0.0  ;;  %v458_v57 = vsel %vm452_vm4, %v2574_v14, 0.0  ;;  %v486_v58 = vadd.f32 %v484_v53, %v472_v50  ;;  %vm1074_vm8 = vcmp.eq.s32.totalorder %v2511_v36, %v2554_v1  ;;  %v926_v0 = vld [vmem:[%s355_s19] sm:$0xff] }
  0xc9   : > { %v1060_v60 = vsel %vm1046_vm6, %v2537_v56, 0.0  ;;  %vm1075_vm9 = vcmp.eq.s32.totalorder %v2514_v37, %v2554_v1  ;;  %vm465_vm10 = vcmp.eq.s32.totalorder %v2466_v7, %v464_v40  ;;  %vm477_vm11 = vcmp.eq.s32.totalorder %v2466_v7, %v476_v46 }
  0xca   : > { %v2674_v54 = vadd.f32 %v457_v52, %v445_v51  ;;  %v545_v59 = vrot.slane %v486_v58, %v2487_v23  ;;  %v1061_v14 = vsel %vm1047_vm7, %v2537_v56, 0.0  ;;  %v471_v36 = vsel %vm465_vm10, %v2577_v15, 0.0 }
  0xcb   : > { %1765 = vmatpush3.bf16.msra.mxu1 %v1764_v44  ;;  %v2680_v61 = vadd.f32 %v458_v57, %v446_v55  ;;  %v538_v62 = vcombine.high %v486_v58, %v486_v58  ;;  %v1088_v63 = vsel %vm1074_vm8, %v2521_v45, 0.0  ;;  %v483_v2 = vsel %vm477_vm11, %v2586_v28, 0.0 }
  0xcc   : > { %1767 = vmatprep.subr.bf16.mxu1 %v2602_v47  ;;  %v553_v3 = vcombine.high %v545_v59, %v545_v59  ;;  %v561_v4 = vrot.slane %v545_v59, %v2487_v23  ;;  %v1089_v5 = vsel %vm1075_vm9, %v2521_v45, 0.0  ;;  %v485_v56 = vadd.f32 %v483_v2, %v471_v36 }
  0xcd   : > { %v1774_v15 = vpack.c.bf16 %v1095_v42, %v1094_v33  ;;  %v1778_v9 = vpack.c.bf16 %v1097_v49, %v1096_v48  ;;  %v1098_v28 = vadd.f32 %v1088_v63, %v1060_v60  ;;  %v1099_v16 = vadd.f32 %v1089_v5, %v1061_v14 }
  0xce   : > { %1688 = vmatmul.mubr.msk.f32.vlgmr.msra.gmra.mrb[0].mxu1 %vm927_vm13, %v926_v0  ;;  %v583_v10 = vcombine.high %v561_v4, %v561_v4  ;;  %v622_v12 = vrot.slane %v561_v4, %v2476_v17  ;;  %v496_v13 = vrot.slane %v485_v56, %v2487_v23  ;;  %v575_v37 = vrot.slane %v553_v3, %v2487_v23 }
  0xcf   : > { %1769 = vmatpush3.bf16.msra.mxu1 %v2602_v47  ;;  %1710 = vmatprep.mubr.msk.f32.mxu1 %vm1144_vm1, %v1136_v8  ;;  %v552_v45 = vrot.slane %v538_v62, %v2487_v23  ;;  %v489_v29 = vcombine.high %v485_v56, %v485_v56  ;;  %v1782_v55 = vpack.c.bf16 %v1099_v16, %v1098_v28 }
  0xd0   : > { %1771 = vmatprep.subr.bf16.mxu1 %v2638_v38  ;;  %v683_v1 = vmul.f32 %v622_v12, %v2674_v54  ;;  %v684_v19 = vmul.f32 %v622_v12, %v2680_v61  ;;  %v504_v47 = vcombine.high %v496_v13, %v496_v13  ;;  %v512_v21 = vrot.slane %v496_v13, %v2487_v23 }
  0xd1   : > { %v626_v27 = vrot.slane %v575_v37, %v2476_v17  ;;  %v630_v26 = vrot.slane %v583_v10, %v2476_v17  ;;  %v585_v30 = vcombine.high %v575_v37, %v575_v37  ;;  %v568_v33 = vrot.slane %v552_v45, %v2487_v23  ;;  %v1137_v37 = vld [vmem:[%s2457_s7 + $0x8] sm:$0xff] }
  0xd2   : > { %v1722_v31 = vpack.c.bf16 %v684_v19, %v683_v1  ;;  %v534_v35 = vcombine.high %v512_v21, %v512_v21  ;;  %v590_v39 = vrot.slane %v512_v21, %v2476_v17  ;;  %v526_v40 = vrot.slane %v504_v47, %v2487_v23 }
  0xd3   : > { %1773 = vmatpush3.bf16.msra.mxu1 %v2638_v38  ;;  %v685_v41 = vmul.f32 %v626_v27, %v2674_v54  ;;  %v686_v32 = vmul.f32 %v626_v27, %v2680_v61  ;;  %v687_v20 = vmul.f32 %v630_v26, %v2674_v54  ;;  %v688_v46 = vmul.f32 %v630_v26, %v2680_v61 }
  0xd4   : > { %1775 = vmatprep.subr.bf16.mxu1 %v1774_v15  ;;  %1723 = vmatprep.subr.bf16.mxu0 %v1722_v31  ;;  %v667_v42 = vmul.f32 %v590_v39, %v2674_v54  ;;  %v668_v38 = vmul.f32 %v590_v39, %v2680_v61  ;;  %v594_v43 = vrot.slane %v526_v40, %v2476_v17  ;;  %v1140_v39 = vld [vmem:[%s2457_s7 + $0x20] sm:$0xff] }
  0xd5   : > { %v598_v44 = vrot.slane %v534_v35, %v2476_v17  ;;  %v1726_v34 = vpack.c.bf16 %v686_v32, %v685_v41  ;;  %v634_v48 = vrot.slane %v585_v30, %v2476_v17  ;;  %v536_v49 = vcombine.high %v526_v40, %v526_v40  ;;  %v1139_v35 = vld [vmem:[%s2457_s7 + $0x18] sm:$0xff] }
  0xd6   : > { %v1724_v50 = vpack.c.bf16 %v668_v38, %v667_v42  ;;  %v669_v51 = vmul.f32 %v594_v43, %v2674_v54  ;;  %v670_v52 = vmul.f32 %v594_v43, %v2680_v61  ;;  %v554_v53 = vcombine.high %v552_v45, %v552_v45  ;;  %v1138_v45 = vld [vmem:[%s2457_s7 + $0x10] sm:$0xff] }
  0xd7   : > { %1777 = vmatpush3.bf16.msra.mxu1 %v1774_v15  ;;  %v671_v57 = vmul.f32 %v598_v44, %v2674_v54  ;;  %v672_v58 = vmul.f32 %v598_v44, %v2680_v61  ;;  %v638_v60 = vrot.slane %v568_v33, %v2476_v17  ;;  %v602_v59 = vrot.slane %v536_v49, %v2476_v17 }
  0xd8   : > { %1779 = vmatprep.subr.bf16.mxu1 %v1778_v9  ;;  %1725 = vmatpush3.bf16.msra.mxu0 %v1724_v50  ;;  %v1728_v0 = vpack.c.bf16 %v670_v52, %v669_v51  ;;  %v503_v14 = vrot.slane %v489_v29, %v2487_v23  ;;  %v1730_v36 = vpack.c.bf16 %v688_v46, %v687_v20  ;;  %v1142_v46 = vld [vmem:[%s2457_s7 + $0x30] sm:$0xff] }
  0xd9   : > { %1727 = vmatprep.subr.bf16.mxu0 %v1726_v34  ;;  %v689_v62 = vmul.f32 %v634_v48, %v2674_v54  ;;  %v690_v63 = vmul.f32 %v634_v48, %v2680_v61  ;;  %v582_v3 = vrot.slane %v554_v53, %v2487_v23  ;;  %v1732_v5 = vpack.c.bf16 %v672_v58, %v671_v57  ;;  %v1141_v34 = vld [vmem:[%s2457_s7 + $0x28] sm:$0xff]  ;;  %v1143_v57 = vld [vmem:[%s2457_s7 + $0x38] sm:$0xff] }
  0xda   : > { %v519_v2 = vrot.slane %v503_v14, %v2487_v23  ;;  %v505_v4 = vcombine.high %v503_v14, %v503_v14  ;;  %v691_v56 = vmul.f32 %v638_v60, %v2674_v54  ;;  %v692_v8 = vmul.f32 %v638_v60, %v2680_v61 }
  0xdb   : > { %1781 = vmatpush3.bf16.msra.mxu1 %v1778_v9  ;;  %v584_v15 = vcombine.high %v568_v33, %v568_v33  ;;  %v673_v10 = vmul.f32 %v602_v59, %v2674_v54  ;;  %v674_v12 = vmul.f32 %v602_v59, %v2680_v61  ;;  %v1734_v13 = vpack.c.bf16 %v690_v63, %v689_v62 }
  0xdc   : > { %1783 = vmatprep.subr.bf16.mxu1 %v1782_v55  ;;  %1729 = vmatpush3.bf16.msra.mxu0 %v1728_v0  ;;  %v606_v9 = vrot.slane %v519_v2, %v2476_v17  ;;  %v533_v28 = vrot.slane %v505_v4, %v2487_v23  ;;  %v642_v16 = vrot.slane %v582_v3, %v2476_v17  ;;  %v1014_v14 = vmul.f32 15.5, %v2464_v6 }
  0xdd   : > { %1731 = vmatprep.subr.bf16.mxu0 %v1730_v36  ;;  %v1738_v1 = vpack.c.bf16 %v692_v8, %v691_v56  ;;  %v646_v19 = vrot.slane %v584_v15, %v2476_v17  ;;  %v535_v47 = vcombine.high %v519_v2, %v519_v2  ;;  %v1736_v21 = vpack.c.bf16 %v674_v12, %v673_v10 }
  0xde   : > { %v675_v29 = vmul.f32 %v606_v9, %v2674_v54  ;;  %v676_v27 = vmul.f32 %v606_v9, %v2680_v61  ;;  %v610_v23 = vrot.slane %v533_v28, %v2476_v17  ;;  %v693_v26 = vmul.f32 %v642_v16, %v2674_v54 }
  0xdf   : > { %1785 = vmatpush3.bf16.msra.mxu1 %v1782_v55  ;;  %v694_v30 = vmul.f32 %v642_v16, %v2680_v61  ;;  %v586_v31 = vcombine.high %v582_v3, %v582_v3  ;;  %v695_v40 = vmul.f32 %v646_v19, %v2674_v54  ;;  %v614_v41 = vrot.slane %v535_v47, %v2476_v17 }
  0xe0   : > { %1733 = vmatpush3.bf16.msra.mxu0 %v1732_v5  ;;  %v1740_v32 = vpack.c.bf16 %v676_v27, %v675_v29  ;;  %v677_v20 = vmul.f32 %v610_v23, %v2674_v54  ;;  %v678_v33 = vmul.f32 %v610_v23, %v2680_v61  ;;  %v537_v42 = vcombine.high %v533_v28, %v533_v28 }
  0xe1   : > { %1735 = vmatprep.subr.bf16.mxu0 %v1734_v13  ;;  %v1742_v38 = vpack.c.bf16 %v694_v30, %v693_v26  ;;  %v696_v43 = vmul.f32 %v646_v19, %v2680_v61  ;;  %v650_v44 = vrot.slane %v586_v31, %v2476_v17  ;;  %v679_v49 = vmul.f32 %v614_v41, %v2674_v54 }
  0xe2   : > { %1711 = vmatmul.mubr.msk.f32.vlgmr.msra.gmra.mrb[2].mxu1 %vm1144_vm1, %v1137_v37  ;;  %v1744_v48 = vpack.c.bf16 %v678_v33, %v677_v20  ;;  %v680_v50 = vmul.f32 %v614_v41, %v2680_v61  ;;  %v618_v51 = vrot.slane %v537_v42, %v2476_v17  ;;  %v1015_v36 = vfloor.f32 %v1014_v14 }
  0xe3   : > { %1713 = vmatprep.mubr.msk.f32.mxu1 %vm1144_vm1, %v1138_v45  ;;  %v1746_v52 = vpack.c.bf16 %v696_v43, %v695_v40  ;;  %v697_v53 = vmul.f32 %v650_v44, %v2674_v54  ;;  %v698_v55 = vmul.f32 %v650_v44, %v2680_v61 }
  0xe4   : > { %1737 = vmatpush3.bf16.msra.mxu0 %v1736_v21  ;;  %v1748_v58 = vpack.c.bf16 %v680_v50, %v679_v49  ;;  %v681_v60 = vmul.f32 %v618_v51, %v2674_v54  ;;  %v682_v0 = vmul.f32 %v618_v51, %v2680_v61  ;;  %v1792_v62 = vtrunc.f32 %v1015_v36 }
  0xe5   : > { %1739 = vmatprep.subr.bf16.mxu0 %v1738_v1  ;;  %v1750_v17 = vpack.c.bf16 %v698_v55, %v697_v53  ;;  %v1016_v3 = vsub.f32 %v1014_v14, %v1015_v36 }
  0xe6   : > { %1714 = vmatmul.mubr.msk.f32.gmra.mrb[4].mxu1 %vm1144_vm1, %v1139_v35  ;;  %v1752_v59 = vpack.c.bf16 %v682_v0, %v681_v60  ;;  %v1793_v63 = vcvt.f32.s32 %v1792_v62 }
  0xe7   : > { %1716 = vmatprep.mubr.msk.f32.mxu1 %vm1144_vm1, %v1140_v39 }
  0xe8   : > { %1741 = vmatpush3.bf16.msra.mxu0 %v1740_v32  ;;  %vm1019_vm12 = vcmp.gt.s32.totalorder %v1793_v63, 0 }
  0xe9   : > { %1743 = vmatprep.subr.bf16.mxu0 %v1742_v38  ;;  %v1020_v54 = vsel %vm1019_vm12, %v1793_v63, 0 }
  0xea   : > { %1717 = vmatmul.mubr.msk.f32.gmra.mrb[6].mxu1 %vm1144_vm1, %v1141_v34  ;;  %vm1021_vm13 = vcmp.lt.s32.totalorder %v1020_v54, 31 }
  0xeb   : > { %1719 = vmatprep.mubr.msk.f32.mxu1 %vm1144_vm1, %v1142_v46  ;;  %v1022_v61 = vsel %vm1021_vm13, %v1020_v54, 31 }
  0xec   : > { %1745 = vmatpush3.bf16.msra.mxu0 %v1744_v48  ;;  %v1023_v2 = vadd.s32 1, %v1022_v61 }
  0xed   : > { %1747 = vmatprep.subr.bf16.mxu0 %v1746_v52 }
  0xee   : > { %1720 = vmatmul.mubr.msk.f32.gmra.mrb[8].mxu1 %vm1144_vm1, %v1143_v57  ;;  %vm1024_vm14 = vcmp.lt.s32.totalorder %v1023_v2, 31 }
  0xf0   : > { %1749 = vmatpush3.bf16.msra.mxu0 %v1748_v58 }
  0xf1   : > { %1751 = vmatprep.subr.bf16.mxu0 %v1750_v17 }
  0xf4   : > { %1753 = vmatpush3.bf16.msra.mxu0 %v1752_v59 }
  0xf7   : > { %768 = vmatmul.mubr.f32.vlgmr.msra.gmra.mrb[0].mxu0 %v2471_v11 }
 0x1a1   : > { %v997_v6 = vpop.f32.mrb[0].mxu1 }
 0x1a2   : > { %1001 = vst [vmem:[%s410_s9] sm:$0xff] %v997_v6  ;;  %v1689_v11 = vpop.f32.mrb[1].mxu1 }
 0x1a3   : > { %2021 = shalt.err (!%p2018_p5)
}
 0x1a4   : > { %s2022_s27 = scalar_lea.hbm %s2776_s12, 128  ;;  %s2026_s17 = scalar_lea.hbm %s2910_s5, 256 }
 0x1a5   : > { %p2023_p3 = scmp.ne.s32.totalorder %s2776_s12, %s2022_s27  ;;  %p2027_p8 = scmp.lt.u32.totalorder %s2776_s12, %s2910_s5 }
 0x1a6   : > { %p2028_p2 = scmp.lt.u32.totalorder %s2026_s17, %s2022_s27  ;;  %p2030_p0 = scmp.lt.u32.totalorder %s2022_s27, %s2776_s12 }
 0x1a7   : > { %p2024_p6 = pnand %p2023_p3, %p2944_p9 }
 0x1a8   : > { %p2029_p12 = por %p2028_p2, %p2027_p8 }
 0x1a9   : > { %p2025_p4 = pneg %p2024_p6 }
 0x1aa   : > { %p2031_p10 = por %p2030_p0, %p2029_p12 }
 0x1ac   : > { %p2032_p13 = pnand %p2031_p10, %p2025_p4 }
 0x1ae   : > { %2035 = shalt.err (!%p2032_p13)
}
 0x1af   : > { %1803 = dma.vmem_to_hbm [thread:$0]  (%p2944_p9), %s2771_s20, 128, %s2776_s12, %s2780_s28   ;;  %v1025_v4 = vsel %vm1024_vm14, %v1023_v2, 31  ;;  %v1017_v5 = vsub.f32 1.0, %v1016_v3  ;;  %v1103_v56 = vrot.slane %v1022_v61, %v2479_v18  ;;  %v1127_v10 = vrot.slane %v1016_v3, %v2479_v18 }
 0x1b0   : > { %v1119_v8 = vrot.slane %v1025_v4, %v2479_v18  ;;  %s1587_s11 = sshll.u32 %s2433_s18, 2  ;;  %s1602_s7 = sshll.u32 %s2150_s24, 6 }
 0x1b1   : > { %v1111_v15 = vrot.slane %v1017_v5, %v2479_v18  ;;  %vm1105_vm15 = vcmp.eq.s32.totalorder %v2484_v22, %v1103_v56  ;;  %vm1104_vm1 = vcmp.eq.s32.totalorder %v2466_v7, %v1103_v56  ;;  %vm1106_vm3 = vcmp.eq.s32.totalorder %v2490_v24, %v1103_v56  ;;  %s403_s9 = scalar_lea.vmem [#allocation10], %s1587_s11  ;;  %s2822_s21 = scalar_lea.hbm %s2909_s4, %s1602_s7 }
 0x1b2   : > { %vm1121_vm0 = vcmp.eq.s32.totalorder %v2484_v22, %v1119_v8  ;;  %vm1120_vm2 = vcmp.eq.s32.totalorder %v2466_v7, %v1119_v8  ;;  %vm1122_vm4 = vcmp.eq.s32.totalorder %v2490_v24, %v1119_v8  ;;  %vm1107_vm5 = vcmp.eq.s32.totalorder %v2493_v25, %v1103_v56  ;;  %s1331_s20 = sshll.u32 %s403_s9, 4  ;;  %s1307_s12 = scalar_lea.sflag [#allocation4], %s2433_s18  ;;  %s2824_s20 = int_to_ptr.vmem [resolvable:$true] %s1331_s20 }
 0x1b3   : > { %v1113_v12 = vsel %vm1105_vm15, %v1111_v15, 0.0  ;;  %v1129_v9 = vsel %vm1121_vm0, %v1127_v10, 0.0  ;;  %v1112_v28 = vsel %vm1104_vm1, %v1111_v15, 0.0  ;;  %v1128_v13 = vsel %vm1120_vm2, %v1127_v10, 0.0  ;;  %s2036_s14 = scalar_lea.vmem %s2824_s20, 64  ;;  %s2171_s1 = smov [#allocation10]  }
 0x1b4   : > { %v1133_v16 = vadd.f32 %v1129_v9, %v1113_v12  ;;  %v1132_v37 = vadd.f32 %v1128_v13, %v1112_v28  ;;  %vm1123_vm6 = vcmp.eq.s32.totalorder %v2493_v25, %v1119_v8  ;;  %v1114_v18 = vsel %vm1106_vm3, %v1111_v15, 0.0  ;;  %p2037_p11 = scmp.ne.s32.totalorder %s2824_s20, %s2036_s14  ;;  %s2040_s29 = sshll.u32 %s2171_s1, 4  ;;  %s2041_s29 = int_to_ptr.vmem [resolvable:$false] %s2040_s29 }
 0x1b5   : > { %v1130_v22 = vsel %vm1122_vm4, %v1127_v10, 0.0  ;;  %v1712_v45 = vpop.f32.mrb[2].mxu1  ;;  %v1115_v7 = vsel %vm1107_vm5, %v1111_v15, 0.0  ;;  %v1131_v47 = vsel %vm1123_vm6, %v1127_v10, 0.0  ;;  %s2042_s16 = scalar_lea.vmem %s2041_s29, 128  ;;  %p2043_p5 = scmp.lt.s32.totalorder %s2824_s20, %s2041_s29 }
 0x1b6   : > { %v1275_v1 = vmul.f32 %v1712_v45, %v1133_v16  ;;  %v1235_v19 = vpop.f32.mrb[3].mxu1  ;;  %v1134_v29 = vadd.f32 %v1130_v22, %v1114_v18  ;;  %v1135_v23 = vadd.f32 %v1131_v47, %v1115_v7  ;;  %p2038_p1 = pnand %p2037_p11, %p2944_p9  ;;  %p2044_p3 = scmp.lt.s32.totalorder %s2042_s16, %s2036_s14 }
 0x1b7   : > { %v1274_v21 = vmul.f32 %v1235_v19, %v1132_v37 }
 0x1b8   : > { %p2039_p7 = pneg %p2038_p1  ;;  %p2045_p6 = por %p2044_p3, %p2043_p5 }
 0x1b9   : > { %v1282_v27 = vadd.f32 %v1275_v1, %v1274_v21  ;;  %v1715_v26 = vpop.f32.mrb[4].mxu1 }
 0x1ba   : > { %v1245_v24 = vpop.f32.mrb[5].mxu1  ;;  %v1277_v31 = vmul.f32 %v1715_v26, %v1135_v23  ;;  %p2046_p4 = pnand %p2045_p6, %p2039_p7 }
 0x1bb   : > { %v1276_v30 = vmul.f32 %v1245_v24, %v1134_v29 }
 0x1bd   : > { %v1283_v35 = vadd.f32 %v1282_v27, %v1276_v30  ;;  %v1718_v39 = vpop.f32.mrb[6].mxu1 }
 0x1be   : > { %v1279_v40 = vmul.f32 %v1718_v39, %v1133_v16  ;;  %v1255_v25 = vpop.f32.mrb[7].mxu1 }
 0x1bf   : > { %v1284_v41 = vadd.f32 %v1283_v35, %v1277_v31  ;;  %v1278_v32 = vmul.f32 %v1255_v25, %v1132_v37 }
 0x1c1   : > { %v1285_v20 = vrot.slane %v1284_v41, 4  ;;  %v1291_v33 = vadd.f32 %v1279_v40, %v1278_v32  ;;  %v1721_v42 = vpop.f32.mrb[8].mxu1 }
 0x1c2   : > { %v1265_v38 = vpop.f32.mrb[9].mxu1  ;;  %v1281_v34 = vmul.f32 %v1721_v42, %v1135_v23 }
 0x1c3   : > { %v1286_v43 = vadd.f32 %v1285_v20, %v1284_v41  ;;  %v1280_v44 = vmul.f32 %v1265_v38, %v1134_v29 }
 0x1c5   : > { %v1292_v46 = vadd.f32 %v1291_v33, %v1280_v44  ;;  %v1287_v48 = vrot.slane %v1286_v43, 2 }
 0x1c7   : > { %v1293_v49 = vadd.f32 %v1292_v46, %v1281_v34  ;;  %v1288_v51 = vadd.f32 %v1287_v48, %v1286_v43 }
 0x1c9   : > { %v1294_v50 = vrot.slane %v1293_v49, 4  ;;  %v1289_v60 = vrot.slane %v1288_v51, 1 }
 0x1ca   : > { %v1641_v53 = vpop.f32.mrb[0].mxu0 }
 0x1cb   : > { %v1295_v52 = vadd.f32 %v1294_v50, %v1293_v49  ;;  %v1642_v55 = vpop.f32.mrb[1].mxu0 }
 0x1cc   : > { %v1643_v58 = vadd.f32 %v1642_v55, %v1641_v53 }
 0x1cd   : > { %v1296_v57 = vrot.slane %v1295_v52, 2 }
 0x1ce   : > { %773 = vst [vmem:[%s403_s9] sm:$0xf] %v1643_v58 }
 0x1cf   : > { %v1297_v0 = vadd.f32 %v1296_v57, %v1295_v52 }
 0x1d0   : > { %2049 = shalt.err (!%p2046_p4)
}
 0x1d1   : > { %s2050_s27 = scalar_lea.hbm %s2822_s21, 64  ;;  %s2054_s17 = scalar_lea.hbm %s2909_s4, 128 }
 0x1d2   : > { %p2051_p8 = scmp.ne.s32.totalorder %s2822_s21, %s2050_s27  ;;  %p2055_p0 = scmp.lt.u32.totalorder %s2822_s21, %s2909_s4 }
 0x1d3   : > { %p2056_p10 = scmp.lt.u32.totalorder %s2054_s17, %s2050_s27  ;;  %p2058_p11 = scmp.lt.u32.totalorder %s2050_s27, %s2822_s21 }
 0x1d4   : > { %p2052_p2 = pnand %p2051_p8, %p2944_p9 }
 0x1d5   : > { %p2057_p13 = por %p2056_p10, %p2055_p0 }
 0x1d6   : > { %p2053_p12 = pneg %p2052_p2 }
 0x1d7   : > { %p2059_p1 = por %p2058_p11, %p2057_p13 }
 0x1d9   : > { %p2060_p7 = pnand %p2059_p1, %p2053_p12 }
 0x1db   : > { %2063 = shalt.err (!%p2060_p7)
}
 0x1dc   : > { %1802 = dma.vmem_to_hbm [thread:$0]  (%p2944_p9), %s2824_s20, 64, %s2822_s21, %s1307_s12   ;;  %v1298_v17 = vrot.slane %v1297_v0, 1  ;;  %vm1302_vm7 = vcmask 1041409   ;;  %v1290_v59 = vadd.f32 %v1289_v60, %v1288_v51 }
 0x1dd   : > { %s1604_s11 = sshll.u32 %s2150_s24, 5  ;;  %s417_s7 = scalar_lea.vmem [#allocation13], %s1583_s26 }
 0x1de   : > { %s1359_s9 = sshll.u32 %s417_s7, 4  ;;  %v1299_v14 = vadd.f32 %v1298_v17, %v1297_v0  ;;  %s2854_s14 = scalar_lea.hbm %s2911_s6, %s1604_s11  ;;  %s2856_s9 = int_to_ptr.vmem [resolvable:$true] %s1359_s9 }
 0x1df   : > { %s2064_s20 = scalar_lea.vmem %s2856_s9, 32  ;;  %s2172_s24 = smov [#allocation13]  }
 0x1e0   : > { %v1303_v36 = vsel %vm1302_vm7, %v1299_v14, %v1290_v59  ;;  %p2065_p5 = scmp.ne.s32.totalorder %s2856_s9, %s2064_s20  ;;  %s2068_s18 = sshll.u32 %s2172_s24, 4  ;;  %s2069_s18 = int_to_ptr.vmem [resolvable:$false] %s2068_s18 }
 0x1e1   : > { %1305 = vst [vmem:[%s417_s7] sm:$0x3] %v1303_v36  ;;  %s2070_s26 = scalar_lea.vmem %s2069_s18, 64  ;;  %p2071_p4 = scmp.lt.s32.totalorder %s2856_s9, %s2069_s18 }
 0x1e2   : > { %p2066_p3 = pnand %p2065_p5, %p2944_p9  ;;  %p2072_p8 = scmp.lt.s32.totalorder %s2070_s26, %s2064_s20 }
 0x1e4   : > { %p2067_p6 = pneg %p2066_p3  ;;  %p2073_p2 = por %p2072_p8, %p2071_p4 }
 0x1e6   : > { %p2074_p12 = pnand %p2073_p2, %p2067_p6 }
 0x1e8   : > { %2077 = shalt.err (!%p2074_p12)
}
 0x1e9   : > { %s2078_s21 = scalar_lea.hbm %s2854_s14, 32  ;;  %s2082_s29 = scalar_lea.hbm %s2911_s6, 64 }
 0x1ea   : > { %p2079_p0 = scmp.ne.s32.totalorder %s2854_s14, %s2078_s21  ;;  %p2083_p11 = scmp.lt.u32.totalorder %s2854_s14, %s2911_s6 }
 0x1eb   : > { %p2084_p1 = scmp.lt.u32.totalorder %s2082_s29, %s2078_s21  ;;  %p2086_p5 = scmp.lt.u32.totalorder %s2078_s21, %s2854_s14 }
 0x1ec   : > { %p2080_p10 = pnand %p2079_p0, %p2944_p9 }
 0x1ed   : > { %p2085_p7 = por %p2084_p1, %p2083_p11 }
 0x1ee   : > { %p2081_p13 = pneg %p2080_p10 }
 0x1ef   : > { %p2087_p3 = por %p2086_p5, %p2085_p7 }
 0x1f1   : > { %p2088_p6 = pnand %p2087_p3, %p2081_p13 }
 0x1f3   : > { %2091 = shalt.err (!%p2088_p6)
}
 0x1f4   : > { %1804 = dma.vmem_to_hbm [thread:$0]  (%p2944_p9), %s2856_s9, 32, %s2854_s14, %s2780_s28  }
 0x1f5 PF: > { %s2945_s13 = sld [smem:[#allocation19_spill]]  ;;  %s2946_s23 = sld [smem:[#allocation24_spill]] }
 0x1f6   : > { %s2947_s17 = sld [smem:[#allocation21_spill]] }
 0x1fb   : > { %s1371_s15 = sand.u32 1, %s2945_s13   ;;  %p2948_p4 = scmp.ne.s32.totalorder %s2946_s23, 0 }
 0x1fc   : > { %p2949_p8 = scmp.ge.s32.totalorder %s2947_s17, 2  ;;  %s1372_s19 = scalar_lea.sflag [#allocation4], %s1371_s15 }
 0x1fe   : > { %p1822_p2 = pnand %p2949_p8, %p2948_p4 }
 0x200   : > { %2129 = dma.done.wait (!%p1822_p2), %s1372_s19, 64  }
 0x201   : > { %2131 = vsyncadd (!%p1822_p2), %s1372_s19, 4294967232  ;;  %s2950_s11 = sadd.s32 4294967294, %s2947_s17  }
 0x202   : > { %s1380_s7 = sand.u32 1, %s2950_s11  }
 0x203   : > { %s1381_s8 = scalar_lea.sflag [#allocation12], %s1380_s7 }
 0x204   : > { %2133 = dma.done.wait (!%p1822_p2), %s1381_s8, 160  }
 0x205   : > { %2135 = vsyncadd (!%p1822_p2), %s1381_s8, 4294967136  ;;  %s32_s26 = sadd.s32 1, %s2947_s17   ;;  %s2951_s10 = sld [smem:[#allocation20_spill]] }
 0x206   : > { %p29_p9 = scmp.ge.s32.totalorder %s32_s26, 4   ;;  %s2952_s23 = sld [smem:[#allocation23_spill]] }
 0x207   : > { %s2953_s28 = sld [smem:[#allocation22_spill]]  ;;  %s2954_s21 = smov %s2142_s22 }
 0x208   : > { %s2956_s24 = smov %s2154_s25  ;;  %31 = sbr.rel (!%p29_p9) target bundleno = 14 (0xe), region = 150 }
 0x20b   : > { %s2955_s22 = smov %s2951_s10 }
 0x20d   : > { %s2957_s25 = smov %s2953_s28 }
 0x20f   :  { %1395 = vsyncpa [#allocation3], 1 }
 0x210   :  { %1397 = vsyncpa [#allocation3 + $0x1], 1 }
 0x211   :  { %1398 = vsyncpa [#allocation6], 1 }
 0x212   :  { %1400 = vsyncpa [#allocation6 + $0x1], 1 }
 0x213   :  { %1401 = vsyncpa [#allocation9], 1 }
 0x214   :  { %1403 = vsyncpa [#allocation9 + $0x1], 1 }
 0x215   :  { %1404 = vsyncpa [#allocation4], 1 }
 0x216   :  { %1406 = vsyncpa [#allocation4 + $0x1], 1 }
 0x217   :  { %1407 = vsyncpa [#allocation12], 1 }
 0x218   :  { %1409 = vsyncpa [#allocation12 + $0x1], 1 }

</bundles_post_ra>
